<compile_context>
chip_gen: v6e
topology: v6e:2x2x1
jax: 0.10.0
libtpu: 0.0.40
codegen_flags: <defaults>
</compile_context>

<pallas_src>
import jax
import jax.numpy as jnp
from jax import lax
from jax.experimental import pallas as pl
from jax.experimental.pallas import tpu as pltpu

_MIB = 1 << 20


def _cparams(sem, vmem_bytes):
    """Explicit scoped-VMEM limit: 2x (double buffering) + margin, clamped to
    v7x's 64 MiB physical VMEM so one setting is safe on v5e/v6e/v7x."""
    limit = int(min(max(2 * vmem_bytes + 4 * _MIB, 8 * _MIB), 64 * _MIB))
    return pltpu.CompilerParams(dimension_semantics=sem, vmem_limit_bytes=limit)


# ----------------------------------------------------------------------------
# 3x3 conv + folded BN + ReLU (row-tiled, in-kernel halo)
# ----------------------------------------------------------------------------
def conv3x3_bn_relu(x, w, scale, bias, *, tile_rows=8):
    """3x3 conv (pad=1, no bias) + folded BatchNorm (eval) + ReLU.  NHWC.

    grid = (B, H // TH).  The input image stays resident in VMEM per batch
    (index_map ignores the row axis -> DMA'd once per batch, no HBM jnp.pad
    round trip); the 1-row halo is built in a small VMEM scratch and the 9
    taps accumulate full-width into a VMEM accumulator (W shifts handled by
    zero-column concat on the output side, so MXU operands stay contiguous).
    """
    B, H, W, Cin = x.shape
    Cout = w.shape[-1]
    TH = tile_rows if H % tile_rows == 0 else H
    R = H // TH
    scale3 = scale.reshape(1, 1, Cout)
    bias3 = bias.reshape(1, 1, Cout)

    def kernel(x_ref, w_ref, s_ref, b_ref, o_ref, pad_ref, acc_ref):
        r0 = pl.multiple_of(pl.program_id(1) * TH, TH)

        # Build the (TH+2, W, Cin) row window with a zero halo (in-kernel pad).
        pad_ref[pl.ds(1, TH), :, :] = x_ref[pl.ds(r0, TH), :, :]

        @pl.when(r0 > 0)
        def _():
            pad_ref[pl.ds(0, 1), :, :] = x_ref[pl.ds(r0 - 1, 1), :, :]

        @pl.when(r0 == 0)
        def _():
            pad_ref[pl.ds(0, 1), :, :] = jnp.zeros((1, W, Cin), jnp.float32)

        @pl.when(r0 + TH < H)
        def _():
            pad_ref[pl.ds(TH + 1, 1), :, :] = x_ref[pl.ds(r0 + TH, 1), :, :]

        @pl.when(r0 + TH >= H)
        def _():
            pad_ref[pl.ds(TH + 1, 1), :, :] = jnp.zeros((1, W, Cin), jnp.float32)

        acc_ref[...] = jnp.zeros((TH, W, Cout), jnp.float32)
        zcol = jnp.zeros((TH, 1, Cout), jnp.float32)
        for dh in range(3):
            # Full-width rows -> reshape is a layout no-op (W % 8 == 0).
            rows = pad_ref[pl.ds(dh, TH), :, :].reshape(TH * W, Cin)
            for dw in range(3):
                t = jnp.dot(rows, w_ref[dh, dw],
                            preferred_element_type=jnp.float32
                            ).reshape(TH, W, Cout)
                if dw == 0:
                    contrib = jnp.concatenate([zcol, t[:, :W - 1, :]], axis=1)
                elif dw == 1:
                    contrib = t
                else:
                    contrib = jnp.concatenate([t[:, 1:, :], zcol], axis=1)
                acc_ref[...] = acc_ref[...] + contrib

        y = acc_ref[...] * s_ref[...] + b_ref[...]          # folded BN
        o_ref[...] = jnp.maximum(y, 0.0)                    # ReLU

    vmem_guess = 4 * (H * W * Cin + 9 * Cin * Cout
                      + (TH + 2) * W * Cin + 2 * TH * W * Cout)
    return pl.pallas_call(
        kernel,
        out_shape=jax.ShapeDtypeStruct((B, H, W, Cout), jnp.float32),
        grid=(B, R),
        in_specs=[
            pl.BlockSpec((None, H, W, Cin), lambda b, r: (b, 0, 0, 0)),
            pl.BlockSpec((3, 3, Cin, Cout), lambda b, r: (0, 0, 0, 0)),
            pl.BlockSpec((1, 1, Cout), lambda b, r: (0, 0, 0)),
            pl.BlockSpec((1, 1, Cout), lambda b, r: (0, 0, 0)),
        ],
        out_specs=pl.BlockSpec((None, TH, W, Cout), lambda b, r: (b, r, 0, 0)),
        scratch_shapes=[
            pltpu.VMEM((TH + 2, W, Cin), jnp.float32),
            pltpu.VMEM((TH, W, Cout), jnp.float32),
        ],
        compiler_params=_cparams(("parallel", "parallel"), vmem_guess),
    )(x, w, scale3, bias3)


# ----------------------------------------------------------------------------
# Position Attention Module (flash-style tiled)
# ----------------------------------------------------------------------------
def pam_module(x, wq, bq, wk, bk, wv, bv, gamma, *, tile_q=128, tile_k=128):
    """PAM_Module.  grid = (B, HW//TQ, HW//TK); the key axis is a sequential
    reduction with running max/sum/acc in VMEM scratch, so the (HW, HW)
    attention matrix is never materialized.  k/v projections are fused into a
    single matmul against a concatenated (C, Cq+C) weight."""
    B, H, W, C = x.shape
    Cq = wq.shape[-1]
    HW = H * W
    TQ = tile_q if HW % tile_q == 0 else HW
    TK = tile_k if HW % tile_k == 0 else HW
    xf = x.reshape(B, HW, C)
    wkv = jnp.concatenate([wk, wv], axis=-1)                  # (C, Cq + C)
    bkv = jnp.concatenate([bk, bv]).reshape(1, Cq + C)
    gamma_arr = jnp.asarray([gamma], jnp.float32)

    def kernel(xq_ref, xk_ref, wq_ref, bq_ref, wkv_ref, bkv_ref, g_ref, o_ref,
               q_s, m_s, l_s, acc_s):
        ki = pl.program_id(2)

        @pl.when(ki == 0)
        def _():
            q_s[...] = (jnp.dot(xq_ref[...], wq_ref[...],
                                preferred_element_type=jnp.float32)
                        + bq_ref[...])
            m_s[...] = jnp.full((TQ, 1), -jnp.inf, jnp.float32)
            l_s[...] = jnp.zeros((TQ, 1), jnp.float32)
            acc_s[...] = jnp.zeros((TQ, C), jnp.float32)

        kv = (jnp.dot(xk_ref[...], wkv_ref[...],
                      preferred_element_type=jnp.float32) + bkv_ref[...])
        k = kv[:, :Cq]
        v = kv[:, Cq:]
        s = lax.dot_general(q_s[...], k, (((1,), (1,)), ((), ())),
                            preferred_element_type=jnp.float32)   # (TQ, TK)
        m_prev = m_s[...]
        m_new = jnp.maximum(m_prev, jnp.max(s, axis=-1, keepdims=True))
        alpha = jnp.exp(m_prev - m_new)
        p = jnp.exp(s - m_new)
        l_s[...] = alpha * l_s[...] + jnp.sum(p, axis=-1, keepdims=True)
        acc_s[...] = alpha * acc_s[...] + jnp.dot(
            p, v, preferred_element_type=jnp.float32)
        m_s[...] = m_new

        @pl.when(ki == pl.num_programs(2) - 1)
        def _():
            out = acc_s[...] * pl.reciprocal(l_s[...], approx=True)
            o_ref[...] = g_ref[0] * out + xq_ref[...]              # residual

    vmem_guess = 4 * (2 * TQ * C + TK * C + C * (2 * Cq + C) + TK * (Cq + C)
                      + TQ * (Cq + C + 2) + TQ * TK)
    y = pl.pallas_call(
        kernel,
        out_shape=jax.ShapeDtypeStruct((B, HW, C), jnp.float32),
        grid=(B, HW // TQ, HW // TK),
        in_specs=[
            pl.BlockSpec((None, TQ, C), lambda b, qi, ki: (b, qi, 0)),
            pl.BlockSpec((None, TK, C), lambda b, qi, ki: (b, ki, 0)),
            pl.BlockSpec((C, Cq), lambda b, qi, ki: (0, 0)),
            pl.BlockSpec((1, Cq), lambda b, qi, ki: (0, 0)),
            pl.BlockSpec((C, Cq + C), lambda b, qi, ki: (0, 0)),
            pl.BlockSpec((1, Cq + C), lambda b, qi, ki: (0, 0)),
            pl.BlockSpec(memory_space=pltpu.MemorySpace.SMEM),
        ],
        out_specs=pl.BlockSpec((None, TQ, C), lambda b, qi, ki: (b, qi, 0)),
        scratch_shapes=[
            pltpu.VMEM((TQ, Cq), jnp.float32),
            pltpu.VMEM((TQ, 1), jnp.float32),
            pltpu.VMEM((TQ, 1), jnp.float32),
            pltpu.VMEM((TQ, C), jnp.float32),
        ],
        compiler_params=_cparams(("parallel", "parallel", "arbitrary"),
                                 vmem_guess),
    )(xf, xf, wq, bq.reshape(1, Cq), wkv, bkv, gamma_arr)
    return y.reshape(B, H, W, C)


# ----------------------------------------------------------------------------
# Channel Attention Module (C x C attention; cheap -> one block per batch)
# ----------------------------------------------------------------------------
def cam_module(x, gamma):
    B, H, W, C = x.shape
    HW = H * W
    xf = x.reshape(B, HW, C)
    gamma_arr = jnp.asarray([gamma], jnp.float32)

    def kernel(x_ref, g_ref, o_ref):
        xb = x_ref[...]                                               # (HW, C)
        energy = lax.dot_general(xb, xb, (((0,), (0,)), ((), ())),
                                 preferred_element_type=jnp.float32)  # (C, C)
        energy_new = jnp.max(energy, axis=-1, keepdims=True) - energy
        e = energy_new - jnp.max(energy_new, axis=-1, keepdims=True)
        p = jnp.exp(e)
        attn = p * pl.reciprocal(jnp.sum(p, axis=-1, keepdims=True),
                                 approx=True)
        out = lax.dot_general(xb, attn, (((1,), (1,)), ((), ())),
                              preferred_element_type=jnp.float32)     # (HW, C)
        o_ref[...] = g_ref[0] * out + xb                              # residual

    vmem_guess = 4 * (2 * HW * C + 2 * C * C)
    y = pl.pallas_call(
        kernel,
        out_shape=jax.ShapeDtypeStruct((B, HW, C), jnp.float32),
        grid=(B,),
        in_specs=[
            pl.BlockSpec((None, HW, C), lambda b: (b, 0, 0)),
            pl.BlockSpec(memory_space=pltpu.MemorySpace.SMEM),
        ],
        out_specs=pl.BlockSpec((None, HW, C), lambda b: (b, 0, 0)),
        compiler_params=_cparams(("parallel",), vmem_guess),
    )(xf, gamma_arr)
    return y.reshape(B, H, W, C)


# ----------------------------------------------------------------------------
# Fused conv6 / conv7 / conv8 (1x1 convs with bias; Dropout is identity)
# ----------------------------------------------------------------------------
def fused_classifier_1x1(sa_conv, sc_conv, w6, b6, w7, b7, w8, b8, *, tile=512):
    """Reads sa_conv / sc_conv once and does ONE wide matmul against the block
    weight  [[w6  0  w8], [0  w7  w8]]  (2Ci, 3Co), emitting a single
    lane-denser (B, HW, 3*Co) slab:  [sa@w6+b6 | sc@w7+b7 | (sa+sc)@w8+b8]."""
    B, H, W, Ci = sa_conv.shape
    Co = w6.shape[-1]
    HW = H * W
    T = tile if HW % tile == 0 else (128 if HW % 128 == 0 else HW)
    z = jnp.zeros((Ci, Co), jnp.float32)
    wcat = jnp.concatenate([
        jnp.concatenate([w6, z, w8], axis=1),
        jnp.concatenate([z, w7, w8], axis=1)], axis=0)        # (2Ci, 3Co)
    bcat = jnp.concatenate([b6, b7, b8]).reshape(1, 3 * Co)
    af = sa_conv.reshape(B, HW, Ci)
    cf = sc_conv.reshape(B, HW, Ci)

    def kernel(a_ref, c_ref, w_ref, b_ref, o_ref):
        xcat = jnp.concatenate([a_ref[...], c_ref[...]], axis=-1)  # (T, 2Ci)
        o_ref[...] = jnp.dot(xcat, w_ref[...],
                             preferred_element_type=jnp.float32) + b_ref[...]

    vmem_guess = 4 * (2 * T * Ci + 2 * Ci * 3 * Co + T * 3 * Co)
    y = pl.pallas_call(
        kernel,
        out_shape=jax.ShapeDtypeStruct((B, HW, 3 * Co), jnp.float32),
        grid=(B, HW // T),
        in_specs=[
            pl.BlockSpec((None, T, Ci), lambda b, t: (b, t, 0)),
            pl.BlockSpec((None, T, Ci), lambda b, t: (b, t, 0)),
            pl.BlockSpec((2 * Ci, 3 * Co), lambda b, t: (0, 0)),
            pl.BlockSpec((1, 3 * Co), lambda b, t: (0, 0)),
        ],
        out_specs=pl.BlockSpec((None, T, 3 * Co), lambda b, t: (b, t, 0)),
        compiler_params=_cparams(("parallel", "parallel"), vmem_guess),
    )(af, cf, wcat, bcat)
    y = y.reshape(B, H, W, 3 * Co)
    return y[..., :Co], y[..., Co:2 * Co], y[..., 2 * Co:]


# ----------------------------------------------------------------------------
# DANetHead forward (Pallas)
# ----------------------------------------------------------------------------
def danet_head_forward(x_nchw, p):
    x = jnp.transpose(x_nchw, (0, 2, 3, 1))                    # NCHW -> NHWC
    Ci = p['conv5a_w'].shape[-1]

    # conv5a + conv5c fused: one pass over x, 2*Ci output channels (wider N).
    w5 = jnp.concatenate([p['conv5a_w'], p['conv5c_w']], axis=-1)
    s5 = jnp.concatenate([p['conv5a_scale'], p['conv5c_scale']])
    b5 = jnp.concatenate([p['conv5a_bias'], p['conv5c_bias']])
    feat12 = conv3x3_bn_relu(x, w5, s5, b5)
    feat1, feat2 = feat12[..., :Ci], feat12[..., Ci:]

    sa_feat = pam_module(feat1, p['pam_wq'], p['pam_bq'], p['pam_wk'],
                         p['pam_bk'], p['pam_wv'], p['pam_bv'], p['pam_gamma'])
    sa_conv = conv3x3_bn_relu(sa_feat, p['conv51_w'],
                              p['conv51_scale'], p['conv51_bias'])

    sc_feat = cam_module(feat2, p['cam_gamma'])
    sc_conv = conv3x3_bn_relu(sc_feat, p['conv52_w'],
                              p['conv52_scale'], p['conv52_bias'])

    # conv6 / conv7 / conv8 fused; feat_sum = sa_conv + sc_conv folded in.
    sa_output, sc_output, sasc_output = fused_classifier_1x1(
        sa_conv, sc_conv, p['conv6_w'], p['conv6_b'],
        p['conv7_w'], p['conv7_b'], p['conv8_w'], p['conv8_b'])

    sa_feat2 = sa_feat  # self.sa(feat1) called twice -> identical result
    t = lambda a: jnp.transpose(a, (0, 3, 1, 2))               # NHWC -> NCHW
    return (t(sa_feat2), t(sasc_output), t(sa_output), t(sc_output))


# ----------------------------------------------------------------------------
# Deterministic parameter init (shapes from DANetHead.__init__)
# ----------------------------------------------------------------------------
def _fold_bn(key, c, eps=1e-5):
    k1, k2, k3, k4 = jax.random.split(key, 4)
    g = 1.0 + 0.1 * jax.random.normal(k1, (c,), jnp.float32)
    beta = 0.1 * jax.random.normal(k2, (c,), jnp.float32)
    mean = 0.1 * jax.random.normal(k3, (c,), jnp.float32)
    var = 0.5 + jax.random.uniform(k4, (c,), jnp.float32)
    scale = g / jnp.sqrt(var + eps)
    return scale, beta - mean * scale


def init_params(key, in_channels, out_channels):
    inter = in_channels // 4
    cq = inter // 8
    ks = iter(jax.random.split(key, 24))

    def w(shape, fan_in):
        return jax.random.normal(next(ks), shape, jnp.float32) / jnp.sqrt(float(fan_in))

    def bvec(c):
        return 0.1 * jax.random.normal(next(ks), (c,), jnp.float32)

    p = {}
    p['conv5a_w'] = w((3, 3, in_channels, inter), 9 * in_channels)
    p['conv5a_scale'], p['conv5a_bias'] = _fold_bn(next(ks), inter)
    p['conv5c_w'] = w((3, 3, in_channels, inter), 9 * in_channels)
    p['conv5c_scale'], p['conv5c_bias'] = _fold_bn(next(ks), inter)
    p['pam_wq'], p['pam_bq'] = w((inter, cq), inter), bvec(cq)
    p['pam_wk'], p['pam_bk'] = w((inter, cq), inter), bvec(cq)
    p['pam_wv'], p['pam_bv'] = w((inter, inter), inter), bvec(inter)
    p['pam_gamma'] = 0.75   # nn.Parameter(torch.zeros(1)); nonzero to exercise path
    p['cam_gamma'] = 0.5    # nn.Parameter(torch.zeros(1)); nonzero to exercise path
    p['conv51_w'] = w((3, 3, inter, inter), 9 * inter)
    p['conv51_scale'], p['conv51_bias'] = _fold_bn(next(ks), inter)
    p['conv52_w'] = w((3, 3, inter, inter), 9 * inter)
    p['conv52_scale'], p['conv52_bias'] = _fold_bn(next(ks), inter)
    p['conv6_w'], p['conv6_b'] = w((inter, out_channels), inter), bvec(out_channels)
    p['conv7_w'], p['conv7_b'] = w((inter, out_channels), inter), bvec(out_channels)
    p['conv8_w'], p['conv8_b'] = w((inter, out_channels), inter), bvec(out_channels)
    # conv9 is defined in __init__ but unused in forward -> omitted.
    return p


# ----------------------------------------------------------------------------
# Pure-JAX reference (for correctness check)
# ----------------------------------------------------------------------------
def _conv3x3_ref(x, w, scale, bias):
    y = lax.conv_general_dilated(x, w, (1, 1), 'SAME',
                                 dimension_numbers=('NHWC', 'HWIO', 'NHWC'))
    return jnp.maximum(y * scale + bias, 0.0)


def _pam_ref(x, wq, bq, wk, bk, wv, bv, gamma):
    B, H, W, C = x.shape
    xf = x.reshape(B, H * W, C)
    q, k, v = xf @ wq + bq, xf @ wk + bk, xf @ wv + bv
    attn = jax.nn.softmax(jnp.einsum('bic,bjc->bij', q, k), axis=-1)
    out = jnp.einsum('bij,bjc->bic', attn, v)
    return (gamma * out + xf).reshape(B, H, W, C)


def _cam_ref(x, gamma):
    B, H, W, C = x.shape
    xf = x.reshape(B, H * W, C)
    energy = jnp.einsum('bpi,bpj->bij', xf, xf)
    attn = jax.nn.softmax(jnp.max(energy, -1, keepdims=True) - energy, axis=-1)
    out = jnp.einsum('bpj,bij->bpi', xf, attn)
    return (gamma * out + xf).reshape(B, H, W, C)


def danet_head_ref(x_nchw, p):
    x = jnp.transpose(x_nchw, (0, 2, 3, 1))
    feat1 = _conv3x3_ref(x, p['conv5a_w'], p['conv5a_scale'], p['conv5a_bias'])
    sa_feat = _pam_ref(feat1, p['pam_wq'], p['pam_bq'], p['pam_wk'], p['pam_bk'],
                       p['pam_wv'], p['pam_bv'], p['pam_gamma'])
    sa_conv = _conv3x3_ref(sa_feat, p['conv51_w'], p['conv51_scale'], p['conv51_bias'])
    sa_out = jnp.einsum('bhwc,cd->bhwd', sa_conv, p['conv6_w']) + p['conv6_b']
    feat2 = _conv3x3_ref(x, p['conv5c_w'], p['conv5c_scale'], p['conv5c_bias'])
    sc_feat = _cam_ref(feat2, p['cam_gamma'])
    sc_conv = _conv3x3_ref(sc_feat, p['conv52_w'], p['conv52_scale'], p['conv52_bias'])
    sc_out = jnp.einsum('bhwc,cd->bhwd', sc_conv, p['conv7_w']) + p['conv7_b']
    sasc_out = jnp.einsum('bhwc,cd->bhwd', sa_conv + sc_conv, p['conv8_w']) + p['conv8_b']
    t = lambda a: jnp.transpose(a, (0, 3, 1, 2))
    return (t(sa_feat), t(sasc_out), t(sa_out), t(sc_out))


# ----------------------------------------------------------------------------
if __name__ == "__main__":
    key = jax.random.PRNGKey(0)
    kx, kp = jax.random.split(key)
    B, Cin, H, W = 2, 64, 16, 16        # inter=16, PAM q/k dim=2, HW=256
    Cout = 6
    x = jax.random.normal(kx, (B, Cin, H, W), jnp.float32)
    params = init_params(kp, Cin, Cout)

    outs = jax.block_until_ready(danet_head_forward(x, params))
    refs = jax.block_until_ready(danet_head_ref(x, params))

    names = ("sa_feat2", "sasc_output", "sa_output", "sc_output")
    for name, o, r in zip(names, outs, refs):
        assert o.shape == r.shape, (name, o.shape, r.shape)
        assert bool(jnp.all(jnp.isfinite(o))), name
        assert bool(jnp.allclose(o, r, rtol=3e-2, atol=3e-2)), name
    print("KERNEL_OK")
</pallas_src>

<mosaic_0001>
module attributes {stable_mosaic.version = 11 : i64} {
  func.func @kernel(%arg0: i32, %arg1: i32, %arg2: memref<1x16x16x64xf32, #tpu.memory_space<vmem>>, %arg3: memref<3x3x64x32xf32, #tpu.memory_space<vmem>>, %arg4: memref<1x1x32xf32, #tpu.memory_space<vmem>>, %arg5: memref<1x1x32xf32, #tpu.memory_space<vmem>>, %arg6: memref<1x8x16x32xf32, #tpu.memory_space<vmem>>, %arg7: memref<10x16x64xf32, #tpu.memory_space<vmem>>, %arg8: memref<8x16x32xf32, #tpu.memory_space<vmem>>) attributes {dimension_semantics = [#tpu.dimension_semantics<parallel>, #tpu.dimension_semantics<parallel>], iteration_bounds = array<i64: 2, 2>, scalar_prefetch = 0 : i64, scratch_operands = 2 : i64, tpu.core_type = #tpu.core_type<tc>, window_params = [{transform_indices = @transform_0, window_bounds = array<i64: 1, 16, 16, 64>}, {pipeline_mode = #tpu.pipeline_mode<synchronous>, transform_indices = @transform_1, window_bounds = array<i64: 3, 3, 64, 32>}, {pipeline_mode = #tpu.pipeline_mode<synchronous>, transform_indices = @transform_2, window_bounds = array<i64: 1, 1, 32>}, {pipeline_mode = #tpu.pipeline_mode<synchronous>, transform_indices = @transform_3, window_bounds = array<i64: 1, 1, 32>}, {transform_indices = @transform_4, window_bounds = array<i64: 1, 8, 16, 32>}]} {
    %c8_i32 = arith.constant 8 : i32
    %0 = arith.muli %arg1, %c8_i32 : i32
    %1 = tpu.assume_multiple %0, 8 : i32
    %c0 = arith.constant 0 : index
    %2 = arith.index_cast %1 : i32 to index
    %c0_0 = arith.constant 0 : index
    %c0_1 = arith.constant 0 : index
    %3 = vector.load %arg2[%c0, %2, %c0_0, %c0_1] : memref<1x16x16x64xf32, #tpu.memory_space<vmem>>, vector<1x8x16x64xf32>
    %4 = vector.shape_cast %3 : vector<1x8x16x64xf32> to vector<8x16x64xf32>
    %c1 = arith.constant 1 : index
    %c0_2 = arith.constant 0 : index
    %c0_3 = arith.constant 0 : index
    %5 = vector.load %arg7[%c1, %c0_2, %c0_3] : memref<10x16x64xf32, #tpu.memory_space<vmem>>, vector<8x16x64xf32>
    tpu.vector_store %arg7[%c1, %c0_2, %c0_3], %4 {strides = array<i32>} : memref<10x16x64xf32, #tpu.memory_space<vmem>>, vector<8x16x64xf32>,
    %c0_i32 = arith.constant 0 : i32
    %6 = arith.cmpi sgt, %1, %c0_i32 : i32
    %7 = arith.extui %6 : i1 to i32
    %c0_i32_4 = arith.constant 0 : i32
    %8 = arith.cmpi ne, %7, %c0_i32_4 : i32
    scf.if %8 {
      %c1_i32 = arith.constant 1 : i32
      %116 = arith.subi %1, %c1_i32 : i32
      %c0_137 = arith.constant 0 : index
      %117 = arith.index_cast %116 : i32 to index
      %c0_138 = arith.constant 0 : index
      %c0_139 = arith.constant 0 : index
      %118 = vector.load %arg2[%c0_137, %117, %c0_138, %c0_139] : memref<1x16x16x64xf32, #tpu.memory_space<vmem>>, vector<1x1x16x64xf32>
      %119 = vector.shape_cast %118 : vector<1x1x16x64xf32> to vector<1x16x64xf32>
      %c0_140 = arith.constant 0 : index
      %c0_141 = arith.constant 0 : index
      %c0_142 = arith.constant 0 : index
      %120 = vector.load %arg7[%c0_140, %c0_141, %c0_142] : memref<10x16x64xf32, #tpu.memory_space<vmem>>, vector<1x16x64xf32>
      tpu.vector_store %arg7[%c0_140, %c0_141, %c0_142], %119 {strides = array<i32>} : memref<10x16x64xf32, #tpu.memory_space<vmem>>, vector<1x16x64xf32>,
    } else {
    }
    %c0_i32_5 = arith.constant 0 : i32
    %9 = arith.cmpi eq, %1, %c0_i32_5 : i32
    %10 = arith.extui %9 : i1 to i32
    %c0_i32_6 = arith.constant 0 : i32
    %11 = arith.cmpi ne, %10, %c0_i32_6 : i32
    scf.if %11 {
      %cst_137 = arith.constant 0.000000e+00 : f32
      %116 = vector.broadcast %cst_137 : f32 to vector<1x16x64xf32>
      %c0_138 = arith.constant 0 : index
      %c0_139 = arith.constant 0 : index
      %c0_140 = arith.constant 0 : index
      %117 = vector.load %arg7[%c0_138, %c0_139, %c0_140] : memref<10x16x64xf32, #tpu.memory_space<vmem>>, vector<1x16x64xf32>
      tpu.vector_store %arg7[%c0_138, %c0_139, %c0_140], %116 {strides = array<i32>} : memref<10x16x64xf32, #tpu.memory_space<vmem>>, vector<1x16x64xf32>,
    } else {
    }
    %c8_i32_7 = arith.constant 8 : i32
    %12 = arith.addi %1, %c8_i32_7 : i32
    %c16_i32 = arith.constant 16 : i32
    %13 = arith.cmpi slt, %12, %c16_i32 : i32
    %14 = arith.extui %13 : i1 to i32
    %c0_i32_8 = arith.constant 0 : i32
    %15 = arith.cmpi ne, %14, %c0_i32_8 : i32
    scf.if %15 {
      %c8_i32_137 = arith.constant 8 : i32
      %116 = arith.addi %1, %c8_i32_137 : i32
      %c0_138 = arith.constant 0 : index
      %117 = arith.index_cast %116 : i32 to index
      %c0_139 = arith.constant 0 : index
      %c0_140 = arith.constant 0 : index
      %118 = vector.load %arg2[%c0_138, %117, %c0_139, %c0_140] : memref<1x16x16x64xf32, #tpu.memory_space<vmem>>, vector<1x1x16x64xf32>
      %119 = vector.shape_cast %118 : vector<1x1x16x64xf32> to vector<1x16x64xf32>
      %c9 = arith.constant 9 : index
      %c0_141 = arith.constant 0 : index
      %c0_142 = arith.constant 0 : index
      %120 = vector.load %arg7[%c9, %c0_141, %c0_142] : memref<10x16x64xf32, #tpu.memory_space<vmem>>, vector<1x16x64xf32>
      tpu.vector_store %arg7[%c9, %c0_141, %c0_142], %119 {strides = array<i32>} : memref<10x16x64xf32, #tpu.memory_space<vmem>>, vector<1x16x64xf32>,
    } else {
    }
    %c8_i32_9 = arith.constant 8 : i32
    %16 = arith.addi %1, %c8_i32_9 : i32
    %c16_i32_10 = arith.constant 16 : i32
    %17 = arith.cmpi sge, %16, %c16_i32_10 : i32
    %18 = arith.extui %17 : i1 to i32
    %c0_i32_11 = arith.constant 0 : i32
    %19 = arith.cmpi ne, %18, %c0_i32_11 : i32
    scf.if %19 {
      %cst_137 = arith.constant 0.000000e+00 : f32
      %116 = vector.broadcast %cst_137 : f32 to vector<1x16x64xf32>
      %c9 = arith.constant 9 : index
      %c0_138 = arith.constant 0 : index
      %c0_139 = arith.constant 0 : index
      %117 = vector.load %arg7[%c9, %c0_138, %c0_139] : memref<10x16x64xf32, #tpu.memory_space<vmem>>, vector<1x16x64xf32>
      tpu.vector_store %arg7[%c9, %c0_138, %c0_139], %116 {strides = array<i32>} : memref<10x16x64xf32, #tpu.memory_space<vmem>>, vector<1x16x64xf32>,
    } else {
    }
    %cst = arith.constant 0.000000e+00 : f32
    %20 = vector.broadcast %cst : f32 to vector<8x16x32xf32>
    %c0_12 = arith.constant 0 : index
    %c0_13 = arith.constant 0 : index
    %c0_14 = arith.constant 0 : index
    %21 = vector.load %arg8[%c0_12, %c0_13, %c0_14] : memref<8x16x32xf32, #tpu.memory_space<vmem>>, vector<8x16x32xf32>
    tpu.vector_store %arg8[%c0_12, %c0_13, %c0_14], %20 {strides = array<i32>} : memref<8x16x32xf32, #tpu.memory_space<vmem>>, vector<8x16x32xf32>,
    %cst_15 = arith.constant 0.000000e+00 : f32
    %22 = vector.broadcast %cst_15 : f32 to vector<8x1x32xf32>
    %c0_16 = arith.constant 0 : index
    %c0_17 = arith.constant 0 : index
    %c0_18 = arith.constant 0 : index
    %23 = vector.load %arg7[%c0_16, %c0_17, %c0_18] : memref<10x16x64xf32, #tpu.memory_space<vmem>>, vector<8x16x64xf32>
    %24 = vector.shape_cast %23 : vector<8x16x64xf32> to vector<128x64xf32>
    %c0_19 = arith.constant 0 : index
    %c0_20 = arith.constant 0 : index
    %c0_21 = arith.constant 0 : index
    %c0_22 = arith.constant 0 : index
    %25 = vector.load %arg3[%c0_19, %c0_20, %c0_21, %c0_22] : memref<3x3x64x32xf32, #tpu.memory_space<vmem>>, vector<1x1x64x32xf32>
    %26 = vector.shape_cast %25 : vector<1x1x64x32xf32> to vector<64x32xf32>
    %cst_23 = arith.constant dense<0.000000e+00> : vector<128x32xf32>
    %27 = tpu.matmul %24, %26, %cst_23 {dimension_numbers = #tpu.dot_dimension_numbers<[1], [0], [0], [1], [0, 0, 1, 1], [], []>} : vector<128x64xf32>, vector<64x32xf32>, vector<128x32xf32> -> vector<128x32xf32>
    %28 = vector.shape_cast %27 : vector<128x32xf32> to vector<8x16x32xf32>
    %29 = vector.extract_strided_slice %28 {offsets = [0, 0, 0], sizes = [8, 15, 32], strides = [1, 1, 1]} : vector<8x16x32xf32> to vector<8x15x32xf32>
    %30 = tpu.concatenate %22, %29 in 1 : vector<8x1x32xf32>, vector<8x15x32xf32> -> vector<8x16x32xf32>
    %c0_24 = arith.constant 0 : index
    %c0_25 = arith.constant 0 : index
    %c0_26 = arith.constant 0 : index
    %31 = vector.load %arg8[%c0_24, %c0_25, %c0_26] : memref<8x16x32xf32, #tpu.memory_space<vmem>>, vector<8x16x32xf32>
    %32 = arith.addf %31, %30 : vector<8x16x32xf32>
    %c0_27 = arith.constant 0 : index
    %c0_28 = arith.constant 0 : index
    %c0_29 = arith.constant 0 : index
    %33 = vector.load %arg8[%c0_27, %c0_28, %c0_29] : memref<8x16x32xf32, #tpu.memory_space<vmem>>, vector<8x16x32xf32>
    tpu.vector_store %arg8[%c0_27, %c0_28, %c0_29], %32 {strides = array<i32>} : memref<8x16x32xf32, #tpu.memory_space<vmem>>, vector<8x16x32xf32>,
    %c0_30 = arith.constant 0 : index
    %c1_31 = arith.constant 1 : index
    %c0_32 = arith.constant 0 : index
    %c0_33 = arith.constant 0 : index
    %34 = vector.load %arg3[%c0_30, %c1_31, %c0_32, %c0_33] : memref<3x3x64x32xf32, #tpu.memory_space<vmem>>, vector<1x1x64x32xf32>
    %35 = vector.shape_cast %34 : vector<1x1x64x32xf32> to vector<64x32xf32>
    %cst_34 = arith.constant dense<0.000000e+00> : vector<128x32xf32>
    %36 = tpu.matmul %24, %35, %cst_34 {dimension_numbers = #tpu.dot_dimension_numbers<[1], [0], [0], [1], [0, 0, 1, 1], [], []>} : vector<128x64xf32>, vector<64x32xf32>, vector<128x32xf32> -> vector<128x32xf32>
    %37 = vector.shape_cast %36 : vector<128x32xf32> to vector<8x16x32xf32>
    %c0_35 = arith.constant 0 : index
    %c0_36 = arith.constant 0 : index
    %c0_37 = arith.constant 0 : index
    %38 = vector.load %arg8[%c0_35, %c0_36, %c0_37] : memref<8x16x32xf32, #tpu.memory_space<vmem>>, vector<8x16x32xf32>
    %39 = arith.addf %38, %37 : vector<8x16x32xf32>
    %c0_38 = arith.constant 0 : index
    %c0_39 = arith.constant 0 : index
    %c0_40 = arith.constant 0 : index
    %40 = vector.load %arg8[%c0_38, %c0_39, %c0_40] : memref<8x16x32xf32, #tpu.memory_space<vmem>>, vector<8x16x32xf32>
    tpu.vector_store %arg8[%c0_38, %c0_39, %c0_40], %39 {strides = array<i32>} : memref<8x16x32xf32, #tpu.memory_space<vmem>>, vector<8x16x32xf32>,
    %c0_41 = arith.constant 0 : index
    %c2 = arith.constant 2 : index
    %c0_42 = arith.constant 0 : index
    %c0_43 = arith.constant 0 : index
    %41 = vector.load %arg3[%c0_41, %c2, %c0_42, %c0_43] : memref<3x3x64x32xf32, #tpu.memory_space<vmem>>, vector<1x1x64x32xf32>
    %42 = vector.shape_cast %41 : vector<1x1x64x32xf32> to vector<64x32xf32>
    %cst_44 = arith.constant dense<0.000000e+00> : vector<128x32xf32>
    %43 = tpu.matmul %24, %42, %cst_44 {dimension_numbers = #tpu.dot_dimension_numbers<[1], [0], [0], [1], [0, 0, 1, 1], [], []>} : vector<128x64xf32>, vector<64x32xf32>, vector<128x32xf32> -> vector<128x32xf32>
    %44 = vector.shape_cast %43 : vector<128x32xf32> to vector<8x16x32xf32>
    %45 = vector.extract_strided_slice %44 {offsets = [0, 1, 0], sizes = [8, 15, 32], strides = [1, 1, 1]} : vector<8x16x32xf32> to vector<8x15x32xf32>
    %46 = tpu.concatenate %45, %22 in 1 : vector<8x15x32xf32>, vector<8x1x32xf32> -> vector<8x16x32xf32>
    %c0_45 = arith.constant 0 : index
    %c0_46 = arith.constant 0 : index
    %c0_47 = arith.constant 0 : index
    %47 = vector.load %arg8[%c0_45, %c0_46, %c0_47] : memref<8x16x32xf32, #tpu.memory_space<vmem>>, vector<8x16x32xf32>
    %48 = arith.addf %47, %46 : vector<8x16x32xf32>
    %c0_48 = arith.constant 0 : index
    %c0_49 = arith.constant 0 : index
    %c0_50 = arith.constant 0 : index
    %49 = vector.load %arg8[%c0_48, %c0_49, %c0_50] : memref<8x16x32xf32, #tpu.memory_space<vmem>>, vector<8x16x32xf32>
    tpu.vector_store %arg8[%c0_48, %c0_49, %c0_50], %48 {strides = array<i32>} : memref<8x16x32xf32, #tpu.memory_space<vmem>>, vector<8x16x32xf32>,
    %c1_51 = arith.constant 1 : index
    %c0_52 = arith.constant 0 : index
    %c0_53 = arith.constant 0 : index
    %50 = vector.load %arg7[%c1_51, %c0_52, %c0_53] : memref<10x16x64xf32, #tpu.memory_space<vmem>>, vector<8x16x64xf32>
    %51 = vector.shape_cast %50 : vector<8x16x64xf32> to vector<128x64xf32>
    %c1_54 = arith.constant 1 : index
    %c0_55 = arith.constant 0 : index
    %c0_56 = arith.constant 0 : index
    %c0_57 = arith.constant 0 : index
    %52 = vector.load %arg3[%c1_54, %c0_55, %c0_56, %c0_57] : memref<3x3x64x32xf32, #tpu.memory_space<vmem>>, vector<1x1x64x32xf32>
    %53 = vector.shape_cast %52 : vector<1x1x64x32xf32> to vector<64x32xf32>
    %cst_58 = arith.constant dense<0.000000e+00> : vector<128x32xf32>
    %54 = tpu.matmul %51, %53, %cst_58 {dimension_numbers = #tpu.dot_dimension_numbers<[1], [0], [0], [1], [0, 0, 1, 1], [], []>} : vector<128x64xf32>, vector<64x32xf32>, vector<128x32xf32> -> vector<128x32xf32>
    %55 = vector.shape_cast %54 : vector<128x32xf32> to vector<8x16x32xf32>
    %56 = vector.extract_strided_slice %55 {offsets = [0, 0, 0], sizes = [8, 15, 32], strides = [1, 1, 1]} : vector<8x16x32xf32> to vector<8x15x32xf32>
    %57 = tpu.concatenate %22, %56 in 1 : vector<8x1x32xf32>, vector<8x15x32xf32> -> vector<8x16x32xf32>
    %c0_59 = arith.constant 0 : index
    %c0_60 = arith.constant 0 : index
    %c0_61 = arith.constant 0 : index
    %58 = vector.load %arg8[%c0_59, %c0_60, %c0_61] : memref<8x16x32xf32, #tpu.memory_space<vmem>>, vector<8x16x32xf32>
    %59 = arith.addf %58, %57 : vector<8x16x32xf32>
    %c0_62 = arith.constant 0 : index
    %c0_63 = arith.constant 0 : index
    %c0_64 = arith.constant 0 : index
    %60 = vector.load %arg8[%c0_62, %c0_63, %c0_64] : memref<8x16x32xf32, #tpu.memory_space<vmem>>, vector<8x16x32xf32>
    tpu.vector_store %arg8[%c0_62, %c0_63, %c0_64], %59 {strides = array<i32>} : memref<8x16x32xf32, #tpu.memory_space<vmem>>, vector<8x16x32xf32>,
    %c1_65 = arith.constant 1 : index
    %c1_66 = arith.constant 1 : index
    %c0_67 = arith.constant 0 : index
    %c0_68 = arith.constant 0 : index
    %61 = vector.load %arg3[%c1_65, %c1_66, %c0_67, %c0_68] : memref<3x3x64x32xf32, #tpu.memory_space<vmem>>, vector<1x1x64x32xf32>
    %62 = vector.shape_cast %61 : vector<1x1x64x32xf32> to vector<64x32xf32>
    %cst_69 = arith.constant dense<0.000000e+00> : vector<128x32xf32>
    %63 = tpu.matmul %51, %62, %cst_69 {dimension_numbers = #tpu.dot_dimension_numbers<[1], [0], [0], [1], [0, 0, 1, 1], [], []>} : vector<128x64xf32>, vector<64x32xf32>, vector<128x32xf32> -> vector<128x32xf32>
    %64 = vector.shape_cast %63 : vector<128x32xf32> to vector<8x16x32xf32>
    %c0_70 = arith.constant 0 : index
    %c0_71 = arith.constant 0 : index
    %c0_72 = arith.constant 0 : index
    %65 = vector.load %arg8[%c0_70, %c0_71, %c0_72] : memref<8x16x32xf32, #tpu.memory_space<vmem>>, vector<8x16x32xf32>
    %66 = arith.addf %65, %64 : vector<8x16x32xf32>
    %c0_73 = arith.constant 0 : index
    %c0_74 = arith.constant 0 : index
    %c0_75 = arith.constant 0 : index
    %67 = vector.load %arg8[%c0_73, %c0_74, %c0_75] : memref<8x16x32xf32, #tpu.memory_space<vmem>>, vector<8x16x32xf32>
    tpu.vector_store %arg8[%c0_73, %c0_74, %c0_75], %66 {strides = array<i32>} : memref<8x16x32xf32, #tpu.memory_space<vmem>>, vector<8x16x32xf32>,
    %c1_76 = arith.constant 1 : index
    %c2_77 = arith.constant 2 : index
    %c0_78 = arith.constant 0 : index
    %c0_79 = arith.constant 0 : index
    %68 = vector.load %arg3[%c1_76, %c2_77, %c0_78, %c0_79] : memref<3x3x64x32xf32, #tpu.memory_space<vmem>>, vector<1x1x64x32xf32>
    %69 = vector.shape_cast %68 : vector<1x1x64x32xf32> to vector<64x32xf32>
    %cst_80 = arith.constant dense<0.000000e+00> : vector<128x32xf32>
    %70 = tpu.matmul %51, %69, %cst_80 {dimension_numbers = #tpu.dot_dimension_numbers<[1], [0], [0], [1], [0, 0, 1, 1], [], []>} : vector<128x64xf32>, vector<64x32xf32>, vector<128x32xf32> -> vector<128x32xf32>
    %71 = vector.shape_cast %70 : vector<128x32xf32> to vector<8x16x32xf32>
    %72 = vector.extract_strided_slice %71 {offsets = [0, 1, 0], sizes = [8, 15, 32], strides = [1, 1, 1]} : vector<8x16x32xf32> to vector<8x15x32xf32>
    %73 = tpu.concatenate %72, %22 in 1 : vector<8x15x32xf32>, vector<8x1x32xf32> -> vector<8x16x32xf32>
    %c0_81 = arith.constant 0 : index
    %c0_82 = arith.constant 0 : index
    %c0_83 = arith.constant 0 : index
    %74 = vector.load %arg8[%c0_81, %c0_82, %c0_83] : memref<8x16x32xf32, #tpu.memory_space<vmem>>, vector<8x16x32xf32>
    %75 = arith.addf %74, %73 : vector<8x16x32xf32>
    %c0_84 = arith.constant 0 : index
    %c0_85 = arith.constant 0 : index
    %c0_86 = arith.constant 0 : index
    %76 = vector.load %arg8[%c0_84, %c0_85, %c0_86] : memref<8x16x32xf32, #tpu.memory_space<vmem>>, vector<8x16x32xf32>
    tpu.vector_store %arg8[%c0_84, %c0_85, %c0_86], %75 {strides = array<i32>} : memref<8x16x32xf32, #tpu.memory_space<vmem>>, vector<8x16x32xf32>,
    %c2_87 = arith.constant 2 : index
    %c0_88 = arith.constant 0 : index
    %c0_89 = arith.constant 0 : index
    %77 = vector.load %arg7[%c2_87, %c0_88, %c0_89] : memref<10x16x64xf32, #tpu.memory_space<vmem>>, vector<8x16x64xf32>
    %78 = vector.shape_cast %77 : vector<8x16x64xf32> to vector<128x64xf32>
    %c2_90 = arith.constant 2 : index
    %c0_91 = arith.constant 0 : index
    %c0_92 = arith.constant 0 : index
    %c0_93 = arith.constant 0 : index
    %79 = vector.load %arg3[%c2_90, %c0_91, %c0_92, %c0_93] : memref<3x3x64x32xf32, #tpu.memory_space<vmem>>, vector<1x1x64x32xf32>
    %80 = vector.shape_cast %79 : vector<1x1x64x32xf32> to vector<64x32xf32>
    %cst_94 = arith.constant dense<0.000000e+00> : vector<128x32xf32>
    %81 = tpu.matmul %78, %80, %cst_94 {dimension_numbers = #tpu.dot_dimension_numbers<[1], [0], [0], [1], [0, 0, 1, 1], [], []>} : vector<128x64xf32>, vector<64x32xf32>, vector<128x32xf32> -> vector<128x32xf32>
    %82 = vector.shape_cast %81 : vector<128x32xf32> to vector<8x16x32xf32>
    %83 = vector.extract_strided_slice %82 {offsets = [0, 0, 0], sizes = [8, 15, 32], strides = [1, 1, 1]} : vector<8x16x32xf32> to vector<8x15x32xf32>
    %84 = tpu.concatenate %22, %83 in 1 : vector<8x1x32xf32>, vector<8x15x32xf32> -> vector<8x16x32xf32>
    %c0_95 = arith.constant 0 : index
    %c0_96 = arith.constant 0 : index
    %c0_97 = arith.constant 0 : index
    %85 = vector.load %arg8[%c0_95, %c0_96, %c0_97] : memref<8x16x32xf32, #tpu.memory_space<vmem>>, vector<8x16x32xf32>
    %86 = arith.addf %85, %84 : vector<8x16x32xf32>
    %c0_98 = arith.constant 0 : index
    %c0_99 = arith.constant 0 : index
    %c0_100 = arith.constant 0 : index
    %87 = vector.load %arg8[%c0_98, %c0_99, %c0_100] : memref<8x16x32xf32, #tpu.memory_space<vmem>>, vector<8x16x32xf32>
    tpu.vector_store %arg8[%c0_98, %c0_99, %c0_100], %86 {strides = array<i32>} : memref<8x16x32xf32, #tpu.memory_space<vmem>>, vector<8x16x32xf32>,
    %c2_101 = arith.constant 2 : index
    %c1_102 = arith.constant 1 : index
    %c0_103 = arith.constant 0 : index
    %c0_104 = arith.constant 0 : index
    %88 = vector.load %arg3[%c2_101, %c1_102, %c0_103, %c0_104] : memref<3x3x64x32xf32, #tpu.memory_space<vmem>>, vector<1x1x64x32xf32>
    %89 = vector.shape_cast %88 : vector<1x1x64x32xf32> to vector<64x32xf32>
    %cst_105 = arith.constant dense<0.000000e+00> : vector<128x32xf32>
    %90 = tpu.matmul %78, %89, %cst_105 {dimension_numbers = #tpu.dot_dimension_numbers<[1], [0], [0], [1], [0, 0, 1, 1], [], []>} : vector<128x64xf32>, vector<64x32xf32>, vector<128x32xf32> -> vector<128x32xf32>
    %91 = vector.shape_cast %90 : vector<128x32xf32> to vector<8x16x32xf32>
    %c0_106 = arith.constant 0 : index
    %c0_107 = arith.constant 0 : index
    %c0_108 = arith.constant 0 : index
    %92 = vector.load %arg8[%c0_106, %c0_107, %c0_108] : memref<8x16x32xf32, #tpu.memory_space<vmem>>, vector<8x16x32xf32>
    %93 = arith.addf %92, %91 : vector<8x16x32xf32>
    %c0_109 = arith.constant 0 : index
    %c0_110 = arith.constant 0 : index
    %c0_111 = arith.constant 0 : index
    %94 = vector.load %arg8[%c0_109, %c0_110, %c0_111] : memref<8x16x32xf32, #tpu.memory_space<vmem>>, vector<8x16x32xf32>
    tpu.vector_store %arg8[%c0_109, %c0_110, %c0_111], %93 {strides = array<i32>} : memref<8x16x32xf32, #tpu.memory_space<vmem>>, vector<8x16x32xf32>,
    %c2_112 = arith.constant 2 : index
    %c2_113 = arith.constant 2 : index
    %c0_114 = arith.constant 0 : index
    %c0_115 = arith.constant 0 : index
    %95 = vector.load %arg3[%c2_112, %c2_113, %c0_114, %c0_115] : memref<3x3x64x32xf32, #tpu.memory_space<vmem>>, vector<1x1x64x32xf32>
    %96 = vector.shape_cast %95 : vector<1x1x64x32xf32> to vector<64x32xf32>
    %cst_116 = arith.constant dense<0.000000e+00> : vector<128x32xf32>
    %97 = tpu.matmul %78, %96, %cst_116 {dimension_numbers = #tpu.dot_dimension_numbers<[1], [0], [0], [1], [0, 0, 1, 1], [], []>} : vector<128x64xf32>, vector<64x32xf32>, vector<128x32xf32> -> vector<128x32xf32>
    %98 = vector.shape_cast %97 : vector<128x32xf32> to vector<8x16x32xf32>
    %99 = vector.extract_strided_slice %98 {offsets = [0, 1, 0], sizes = [8, 15, 32], strides = [1, 1, 1]} : vector<8x16x32xf32> to vector<8x15x32xf32>
    %100 = tpu.concatenate %99, %22 in 1 : vector<8x15x32xf32>, vector<8x1x32xf32> -> vector<8x16x32xf32>
    %c0_117 = arith.constant 0 : index
    %c0_118 = arith.constant 0 : index
    %c0_119 = arith.constant 0 : index
    %101 = vector.load %arg8[%c0_117, %c0_118, %c0_119] : memref<8x16x32xf32, #tpu.memory_space<vmem>>, vector<8x16x32xf32>
    %102 = arith.addf %101, %100 : vector<8x16x32xf32>
    %c0_120 = arith.constant 0 : index
    %c0_121 = arith.constant 0 : index
    %c0_122 = arith.constant 0 : index
    %103 = vector.load %arg8[%c0_120, %c0_121, %c0_122] : memref<8x16x32xf32, #tpu.memory_space<vmem>>, vector<8x16x32xf32>
    tpu.vector_store %arg8[%c0_120, %c0_121, %c0_122], %102 {strides = array<i32>} : memref<8x16x32xf32, #tpu.memory_space<vmem>>, vector<8x16x32xf32>,
    %c0_123 = arith.constant 0 : index
    %c0_124 = arith.constant 0 : index
    %c0_125 = arith.constant 0 : index
    %104 = vector.load %arg8[%c0_123, %c0_124, %c0_125] : memref<8x16x32xf32, #tpu.memory_space<vmem>>, vector<8x16x32xf32>
    %c0_126 = arith.constant 0 : index
    %c0_127 = arith.constant 0 : index
    %c0_128 = arith.constant 0 : index
    %105 = vector.load %arg4[%c0_126, %c0_127, %c0_128] : memref<1x1x32xf32, #tpu.memory_space<vmem>>, vector<1x1x32xf32>
    %106 = vector.broadcast %105 : vector<1x1x32xf32> to vector<8x16x32xf32>
    %107 = arith.mulf %104, %106 : vector<8x16x32xf32>
    %c0_129 = arith.constant 0 : index
    %c0_130 = arith.constant 0 : index
    %c0_131 = arith.constant 0 : index
    %108 = vector.load %arg5[%c0_129, %c0_130, %c0_131] : memref<1x1x32xf32, #tpu.memory_space<vmem>>, vector<1x1x32xf32>
    %109 = vector.broadcast %108 : vector<1x1x32xf32> to vector<8x16x32xf32>
    %110 = arith.addf %107, %109 : vector<8x16x32xf32>
    %cst_132 = arith.constant 0.000000e+00 : f32
    %111 = vector.broadcast %cst_132 : f32 to vector<8x16x32xf32>
    %112 = arith.maximumf %110, %111 : vector<8x16x32xf32>
    %c0_133 = arith.constant 0 : index
    %c0_134 = arith.constant 0 : index
    %c0_135 = arith.constant 0 : index
    %c0_136 = arith.constant 0 : index
    %113 = vector.load %arg6[%c0_133, %c0_134, %c0_135, %c0_136] : memref<1x8x16x32xf32, #tpu.memory_space<vmem>>, vector<1x8x16x32xf32>
    %114 = vector.shape_cast %113 : vector<1x8x16x32xf32> to vector<8x16x32xf32>
    %115 = vector.shape_cast %112 : vector<8x16x32xf32> to vector<1x8x16x32xf32>
    tpu.vector_store %arg6[%c0_133, %c0_134, %c0_135, %c0_136], %115 {strides = array<i32>} : memref<1x8x16x32xf32, #tpu.memory_space<vmem>>, vector<1x8x16x32xf32>,
    return
  }
  func.func @transform_0(%arg0: i32, %arg1: i32) -> (i32, i32, i32, i32) {
    %c0_i32 = arith.constant 0 : i32
    %c0_i32_0 = arith.constant 0 : i32
    %c0_i32_1 = arith.constant 0 : i32
    %c0_i32_2 = arith.constant 0 : i32
    return %arg0, %c0_i32, %c0_i32_0, %c0_i32_1 : i32, i32, i32, i32
  }
  func.func @transform_1(%arg0: i32, %arg1: i32) -> (i32, i32, i32, i32) {
    %c0_i32 = arith.constant 0 : i32
    %c0_i32_0 = arith.constant 0 : i32
    %c0_i32_1 = arith.constant 0 : i32
    %c0_i32_2 = arith.constant 0 : i32
    %c0_i32_3 = arith.constant 0 : i32
    return %c0_i32, %c0_i32_0, %c0_i32_1, %c0_i32_2 : i32, i32, i32, i32
  }
  func.func @transform_2(%arg0: i32, %arg1: i32) -> (i32, i32, i32) {
    %c0_i32 = arith.constant 0 : i32
    %c0_i32_0 = arith.constant 0 : i32
    %c0_i32_1 = arith.constant 0 : i32
    %c0_i32_2 = arith.constant 0 : i32
    return %c0_i32, %c0_i32_0, %c0_i32_1 : i32, i32, i32
  }
  func.func @transform_3(%arg0: i32, %arg1: i32) -> (i32, i32, i32) {
    %c0_i32 = arith.constant 0 : i32
    %c0_i32_0 = arith.constant 0 : i32
    %c0_i32_1 = arith.constant 0 : i32
    %c0_i32_2 = arith.constant 0 : i32
    return %c0_i32, %c0_i32_0, %c0_i32_1 : i32, i32, i32
  }
  func.func @transform_4(%arg0: i32, %arg1: i32) -> (i32, i32, i32, i32) {
    %c0_i32 = arith.constant 0 : i32
    %c0_i32_0 = arith.constant 0 : i32
    %c0_i32_1 = arith.constant 0 : i32
    return %arg0, %arg1, %c0_i32, %c0_i32_0 : i32, i32, i32, i32
  }
}

</mosaic_0001>

<bundles_post_ra>
// kernel: tpu_custom_call.1
= control target key start
LH: loop header
LB: loop body
LE: loop exit
PB: predicated region body
PF: predicated region fallthrough
CT: control target
= control target key end

     0   :  { %9 = vsyncpa [#allocation5], 0  ;;  %s4993_s0 = inlined_call_operand.vmem [shape: f32[2,16,16,64], index: 0, kind: input, shape index: {}]   ;;  %s4994_s1 = inlined_call_operand.vmem [shape: f32[3,3,64,32], index: 1, kind: input, shape index: {}]   ;;  %s4995_s2 = inlined_call_operand.vmem [shape: f32[1,1,32], index: 2, kind: input, shape index: {}]   ;;  %s4996_s3 = inlined_call_operand.vmem [shape: f32[1,1,32], index: 3, kind: input, shape index: {}]   ;;  %s4997_s4 = inlined_call_operand.hbm [shape: f32[2,16,16,32], index: 4, kind: output, shape index: {}]  }
   0x1   :  { %11 = vsyncpa [#allocation5 + $0x1], 0  ;;  %s3926_s15 = smov 0   ;;  %s3928_s16 = smov 0  }
   0x2   :  { %s3930_s17 = smov 0   ;;  %s3932_s18 = smov 0  }
   0x3   :  { %s3934_s19 = smov 0   ;;  %s3936_s20 = smov 0  }
   0x4   :  { %s3938_s21 = smov 0   ;;  %s3940_s22 = smov 0  }
   0x5 LB: > { %s2892_s23 = sadd.s32 4294967295, %s3893_s22   ;;  %s2893_s24 = sadd.s32 4294967294, %s3893_s22   ;;  %s3893_s22 = sphi %s3940_s22, %s17_s22   ;;  %s3889_s21 = sphi %s3938_s21, %s5006_s21   ;;  %s3885_s20 = sphi %s3936_s20, %s5005_s20   ;;  %s3881_s19 = sphi %s3934_s19, %s5004_s19   ;;  %s3877_s18 = sphi %s3932_s18, %s5003_s18   ;;  %s3873_s17 = sphi %s3930_s17, %s5002_s17   ;;  %s3869_s16 = sphi %s3928_s16, %s5001_s16   ;;  %s3865_s15 = sphi %s3926_s15, %s5000_s15  }
   0x6   : > { %s26_s25 = sadd.s32 1, %s3885_s20  ;;  %s29_s26 = sadd.s32 1, %s3889_s21 }
   0x7   : > { %p27_p0 = scmp.ge.s32.totalorder %s26_s25, 2  ;;  %p137_p1 = scmp.ne.s32.totalorder %s3873_s17, %s3869_s16 }
   0x8   : > { %p138_p2 = scmp.eq.s32.totalorder %s2892_s23, 3  ;;  %p143_p5 = scmp.ne.s32.totalorder %s3869_s16, %s3865_s15 }
   0x9   : > { %s5008_s25 = smov (%p27_p0, %s26_s25), 0  ;;  %s5010_s26 = smov (!%p27_p0, %s29_s26), %s3889_s21 }
   0xa   : > { %s123_s27 = ssub.s32 %s3885_s20, %s5008_s25  ;;  %p3977_p3 = por %p138_p2, %p137_p1 }
   0xb   : > { %p31_p4 = scmp.ge.s32.totalorder %s5010_s26, 2  ;;  %p144_p6 = scmp.eq.s32.totalorder %s2893_s24, 3 }
   0xc   : > { %p2896_p7 = scmp.ge.s32.totalorder %s3893_s22, 1  ;;  %p179_p9 = scmp.lt.s32.totalorder %s3893_s22, 5 }
   0xd   : > { %s5012_s26 = smov (%p31_p4, %s5010_s26), 0  ;;  %p3986_p8 = por %p144_p6, %p143_p5 }
   0xe   : > { %s122_s30 = ssub.s32 %s3889_s21, %s5012_s26  ;;  %s127_s5 = sadd.s32 1, %s3873_s17 }
   0xf   : > { %s124_s6 = sor.u32 %s123_s27, %s122_s30  ;;  %p180_p10 = pnand %p2896_p7, %p179_p9 }
  0x10   : > { %p125_p11 = scmp.eq.s32.totalorder %s124_s6, 0  ;;  %s202_s8 = sand.u32 (!%p180_p10), 1, %s3869_s16  }
  0x11   : > { %183 = sbr.rel (%p180_p10) target bundleno = 465 (0x1d1), region = 36  ;;  %p205_p12 = scmp.lt.s32.totalorder (!%p180_p10), %s3881_s19, 1 }
  0x12   : > { %s3995_s7 = scalar_select %p125_p11, %s3873_s17, %s127_s5  }
  0x13   : > { %s4001_s9 = sshll.u32 (!%p180_p10), %s202_s8, 7  ;;  %s4004_s10 = sshll.u32 (!%p180_p10), %s3877_s18, 3 }
  0x14   : > { %s3130_s12 = sshll.u32 (!%p180_p10), %s3877_s18, 7  ;;  %s4049_s30 = scalar_lea.vmem (!%p180_p10), [#allocation4], %s4001_s9 }
  0x15   : > { %p2902_p13 = scmp.le.s32.totalorder (!%p180_p10), %s4004_s10, 0 }
  0x16   : > { %s206_s11 = scalar_select %p205_p12, %s3881_s19, 1  ;;  %vm231_vm0 = vcmask 523264  }
  0x17   : > { %s2903_s5 = sadd.s32 (!%p2902_p13), 4294967295, %s4004_s10 }
  0x18   : > { %s3129_s13 = sshll.u32 %s206_s11, 8  ;;  %s2904_s6 = sshll.u32 (!%p2902_p13), %s2903_s5, 4 }
  0x19   : > { %s4011_s24 = scalar_lea.vmem %s4993_s0, %s3129_s13 }
  0x1a   : > { %s4014_s27 = scalar_lea.vmem %s4011_s24, %s3130_s12  ;;  %s254_s11 = scalar_lea.vmem (!%p2902_p13), %s4011_s24, %s2904_s6 }
  0x1b   : > { %v214_v0 = vld [vmem:[%s4014_s27] sm:$0xff]  ;;  %v215_v1 = vld [vmem:[%s4014_s27 + $0x8] sm:$0xff]  ;;  %v216_v2 = vld [vmem:[%s4014_s27 + $0x10] sm:$0xff] }
  0x1c   : > { %232 = vst.msk [vmem:[#allocation2 + $0x10] sm:$0xff] %vm231_vm0, %v214_v0  ;;  %233 = vst.msk [vmem:[#allocation2 + $0x18] sm:$0xff] %vm231_vm0, %v215_v1  ;;  %v217_v3 = vld [vmem:[%s4014_s27 + $0x18] sm:$0xff]  ;;  %v218_v4 = vld [vmem:[%s4014_s27 + $0x20] sm:$0xff] }
  0x1d   : > { %234 = vst.msk [vmem:[#allocation2 + $0x20] sm:$0xff] %vm231_vm0, %v216_v2  ;;  %v219_v5 = vld [vmem:[%s4014_s27 + $0x28] sm:$0xff]  ;;  %235 = vst.msk [vmem:[#allocation2 + $0x28] sm:$0xff] %vm231_vm0, %v217_v3  ;;  %v220_v6 = vld [vmem:[%s4014_s27 + $0x30] sm:$0xff] }
  0x1e   : > { %236 = vst.msk [vmem:[#allocation2 + $0x30] sm:$0xff] %vm231_vm0, %v218_v4  ;;  %237 = vst.msk [vmem:[#allocation2 + $0x38] sm:$0xff] %vm231_vm0, %v219_v5  ;;  %v221_v7 = vld [vmem:[%s4014_s27 + $0x38] sm:$0xff]  ;;  %v222_v8 = vld [vmem:[%s4014_s27 + $0x40] sm:$0xff] }
  0x1f   : > { %238 = vst.msk [vmem:[#allocation2 + $0x40] sm:$0xff] %vm231_vm0, %v220_v6  ;;  %239 = vst.msk [vmem:[#allocation2 + $0x48] sm:$0xff] %vm231_vm0, %v221_v7  ;;  %v223_v9 = vld [vmem:[%s4014_s27 + $0x48] sm:$0xff]  ;;  %v224_v10 = vld [vmem:[%s4014_s27 + $0x50] sm:$0xff]  ;;  %251 = sbr.rel (%p2902_p13) target bundleno = 38 (0x26), region = 40 }
  0x20   : > { %240 = vst.msk [vmem:[#allocation2 + $0x50] sm:$0xff] %vm231_vm0, %v222_v8  ;;  %v225_v11 = vld [vmem:[%s4014_s27 + $0x58] sm:$0xff]  ;;  %241 = vst.msk [vmem:[#allocation2 + $0x58] sm:$0xff] %vm231_vm0, %v223_v9  ;;  %v226_v12 = vld [vmem:[%s4014_s27 + $0x60] sm:$0xff] }
  0x21   : > { %242 = vst.msk [vmem:[#allocation2 + $0x60] sm:$0xff] %vm231_vm0, %v224_v10  ;;  %243 = vst.msk [vmem:[#allocation2 + $0x68] sm:$0xff] %vm231_vm0, %v225_v11  ;;  %v227_v13 = vld [vmem:[%s4014_s27 + $0x68] sm:$0xff]  ;;  %v228_v14 = vld [vmem:[%s4014_s27 + $0x70] sm:$0xff] }
  0x22   : > { %244 = vst.msk [vmem:[#allocation2 + $0x70] sm:$0xff] %vm231_vm0, %v226_v12  ;;  %245 = vst.msk [vmem:[#allocation2 + $0x78] sm:$0xff] %vm231_vm0, %v227_v13  ;;  %v229_v15 = vld [vmem:[%s4014_s27 + $0x78] sm:$0xff] }
  0x23   : > { %246 = vst.msk [vmem:[#allocation2 + $0x80] sm:$0xff] %vm231_vm0, %v228_v14  ;;  %247 = vst.msk [vmem:[#allocation2 + $0x88] sm:$0xff] %vm231_vm0, %v229_v15 }
  0x24   : > { %v255_v16 = vld [vmem:[%s254_s11] sm:$0xff]  ;;  %v256_v17 = vld [vmem:[%s254_s11 + $0x8] sm:$0xff] }
  0x25   : > { %257 = vst.msk [vmem:[#allocation2] sm:$0xff] %vm231_vm0, %v255_v16  ;;  %258 = vst.msk [vmem:[#allocation2 + $0x8] sm:$0xff] %vm231_vm0, %v256_v17 }
  0x26 PF: > { %p2905_p0 = scmp.ne.s32.totalorder %s4004_s10, 0 }
  0x28   : > { %262 = sbr.rel (%p2905_p0) target bundleno = 47 (0x2f), region = 44 }
  0x2d   : > { %v3895_v18 = vmov 0.0  }
  0x2e   : > { %263 = vst.msk [vmem:[#allocation2] sm:$0xff] %vm231_vm0, %v3895_v18  ;;  %264 = vst.msk [vmem:[#allocation2 + $0x8] sm:$0xff] %vm231_vm0, %v3895_v18 }
  0x2f PF: > { %s265_s9 = sadd.s32 8, %s4004_s10 }
  0x30   : > { %p2906_p1 = scmp.ge.s32.totalorder %s265_s9, 16 }
  0x32   : > { %269 = sbr.rel (%p2906_p1) target bundleno = 57 (0x39), region = 48 }
  0x37   : > { %v2909_v19 = vld [vmem:[%s4014_s27 + $0x80] sm:$0xff]  ;;  %v2910_v20 = vld [vmem:[%s4014_s27 + $0x88] sm:$0xff] }
  0x38   : > { %275 = vst.msk [vmem:[#allocation2 + $0x90] sm:$0xff] %vm231_vm0, %v2909_v19  ;;  %276 = vst.msk [vmem:[#allocation2 + $0x98] sm:$0xff] %vm231_vm0, %v2910_v20 }
  0x39 PF: > { %p2911_p2 = scmp.lt.s32.totalorder %s265_s9, 16 }
  0x3b   : > { %280 = sbr.rel (%p2911_p2) target bundleno = 66 (0x42), region = 52 }
  0x40   : > { %v3896_v21 = vmov 0.0  }
  0x41   : > { %282 = vst.msk [vmem:[#allocation2 + $0x90] sm:$0xff] %vm231_vm0, %v3896_v21  ;;  %283 = vst.msk [vmem:[#allocation2 + $0x98] sm:$0xff] %vm231_vm0, %v3896_v21 }
  0x42 PF: > { %v324_v22 = vld [vmem:[%s4994_s1 + $0x38] sm:$0xff]  ;;  %v323_v23 = vld [vmem:[%s4994_s1 + $0x30] sm:$0xff]  ;;  %v322_v24 = vld [vmem:[%s4994_s1 + $0x28] sm:$0xff]  ;;  %vm284_vm1 = vcmask 261120   ;;  %vm534_vm2 = vcmask 1040384   ;;  %vm1003_vm3 = vcmask 1046528  }
  0x43   : > { %3709 = vmatprep.subr.mxu1 %v324_v22  ;;  %3349 = vmatprep.subr.mxu0 %v324_v22  ;;  %v321_v25 = vld [vmem:[%s4994_s1 + $0x20] sm:$0xff]  ;;  %v320_v26 = vld [vmem:[%s4994_s1 + $0x18] sm:$0xff]  ;;  %v319_v27 = vld [vmem:[%s4994_s1 + $0x10] sm:$0xff]  ;;  %s3132_s24 = sshll.u32 %s3877_s18, 4  ;;  %s3125_s27 = sshll.u32 %s3881_s19, 5 }
  0x44   : > { %3717 = vmatpush3.msra.mxu1 %v324_v22  ;;  %3350 = vmatpush3.msra.mxu0 %v324_v22  ;;  %v318_v28 = vld [vmem:[%s4994_s1 + $0x8] sm:$0xff]  ;;  %v317_v29 = vld [vmem:[%s4994_s1] sm:$0xff]  ;;  %v2935_v32 = vld [vmem:[%s4994_s1 + $0x78] sm:$0xff]  ;;  %v3897_v22 = vmov 0.0   ;;  %s2805_s5 = sadd.s32 %s3132_s24, %s3125_s27  ;;  %s2808_s19 = sshll.u32 %s4049_s30, 4  ;;  %s4934_s19 = int_to_ptr.vmem [resolvable:$true] %s2808_s19 }
  0x45   : > { %3710 = vmatprep.subr.mxu1 %v323_v23  ;;  %3351 = vmatprep.subr.mxu0 %v323_v23  ;;  %v4090_v30 = vld [vmem:[#allocation2 + $0x40] sm:$0xff]  ;;  %v4092_v31 = vld [vmem:[#allocation2 + $0x48] sm:$0xff]  ;;  %v2934_v35 = vld [vmem:[%s4994_s1 + $0x70] sm:$0xff]  ;;  %293 = vst.msk [vmem:[#allocation3 + $0x40] sm:$0xff] %vm284_vm1, %v3897_v22  ;;  %s3126_s18 = sshll.u32 %s2805_s5, 7  ;;  %s4942_s10 = scalar_lea.sflag [#allocation5], %s202_s8 }
  0x46   : > { %3718 = vmatpush3.msra.mxu1 %v323_v23  ;;  %3352 = vmatpush3.msra.mxu0 %v323_v23  ;;  %v4099_v33 = vld [vmem:[#allocation2] sm:$0xff]  ;;  %v4101_v34 = vld [vmem:[#allocation2 + $0x8] sm:$0xff]  ;;  %v4108_v36 = vld [vmem:[#allocation2 + $0x50] sm:$0xff]  ;;  %294 = vst.msk [vmem:[#allocation3 + $0x48] sm:$0xff] %vm284_vm1, %v3897_v22  ;;  %s4932_s9 = scalar_lea.hbm %s4997_s4, %s3126_s18  ;;  %s3801_s12 = scalar_lea.vmem %s4934_s19, 2048 }
  0x47   : > { %3711 = vmatprep.subr.mxu1 %v322_v24  ;;  %3353 = vmatprep.subr.mxu0 %v322_v24  ;;  %v4112_v37 = vld [vmem:[#allocation2 + $0x10] sm:$0xff]  ;;  %v4116_v38 = vld [vmem:[#allocation2 + $0x58] sm:$0xff]  ;;  %v2933_v39 = vld [vmem:[%s4994_s1 + $0x68] sm:$0xff]  ;;  %285 = vst.msk [vmem:[#allocation3] sm:$0xff] %vm284_vm1, %v3897_v22  ;;  %p3802_p4 = scmp.ne.s32.totalorder %s4934_s19, %s3801_s12  ;;  %s3898_s13 = smov [#allocation4]  }
  0x48   : > { %3719 = vmatpush3.msra.mxu1 %v322_v24  ;;  %3354 = vmatpush3.msra.mxu0 %v322_v24  ;;  %v4123_v40 = vld [vmem:[#allocation2 + $0x18] sm:$0xff]  ;;  %v2932_v41 = vld [vmem:[%s4994_s1 + $0x60] sm:$0xff]  ;;  %v4139_v44 = vld [vmem:[#allocation2 + $0x68] sm:$0xff]  ;;  %286 = vst.msk [vmem:[#allocation3 + $0x8] sm:$0xff] %vm284_vm1, %v3897_v22  ;;  %s3805_s14 = sshll.u32 %s3898_s13, 4  ;;  %s3806_s14 = int_to_ptr.vmem [resolvable:$false] %s3805_s14 }
  0x49   : > { %3712 = vmatprep.subr.mxu1 %v321_v25  ;;  %3355 = vmatprep.subr.mxu0 %v321_v25  ;;  %v2959_v42 = vld [vmem:[%s4994_s1 + $0xb8] sm:$0xff]  ;;  %v4135_v43 = vld [vmem:[#allocation2 + $0x60] sm:$0xff]  ;;  %v2958_v46 = vld [vmem:[%s4994_s1 + $0xb0] sm:$0xff]  ;;  %287 = vst.msk [vmem:[#allocation3 + $0x10] sm:$0xff] %vm284_vm1, %v3897_v22  ;;  %p3803_p5 = pnand %p3802_p4, %p3977_p3  ;;  %s3807_s23 = scalar_lea.vmem %s3806_s14, 4096 }
  0x4a   : > { %3720 = vmatpush3.msra.mxu1 %v321_v25  ;;  %3356 = vmatpush3.msra.mxu0 %v321_v25  ;;  %v2931_v45 = vld [vmem:[%s4994_s1 + $0x58] sm:$0xff]  ;;  %v4149_v47 = vld [vmem:[#allocation2 + $0x20] sm:$0xff]  ;;  %v2930_v48 = vld [vmem:[%s4994_s1 + $0x50] sm:$0xff]  ;;  %288 = vst.msk [vmem:[#allocation3 + $0x18] sm:$0xff] %vm284_vm1, %v3897_v22  ;;  %p3808_p7 = scmp.lt.s32.totalorder %s4934_s19, %s3806_s14  ;;  %p3809_p9 = scmp.lt.s32.totalorder %s3807_s23, %s3801_s12 }
  0x4b   : > { %3713 = vmatprep.subr.mxu1 %v320_v26  ;;  %3357 = vmatprep.subr.mxu0 %v320_v26  ;;  %v4156_v49 = vld [vmem:[#allocation2 + $0x28] sm:$0xff]  ;;  %v4163_v51 = vld [vmem:[#allocation2 + $0x70] sm:$0xff]  ;;  %v4165_v52 = vld [vmem:[#allocation2 + $0x78] sm:$0xff]  ;;  %289 = vst.msk [vmem:[#allocation3 + $0x20] sm:$0xff] %vm284_vm1, %v3897_v22  ;;  %p3804_p6 = pneg %p3803_p5 }
  0x4c   : > { %3721 = vmatpush3.msra.mxu1 %v320_v26  ;;  %3358 = vmatpush3.msra.mxu0 %v320_v26  ;;  %v2957_v50 = vld [vmem:[%s4994_s1 + $0xa8] sm:$0xff]  ;;  %v2956_v54 = vld [vmem:[%s4994_s1 + $0xa0] sm:$0xff]  ;;  %v4177_v55 = vld [vmem:[#allocation2 + $0x30] sm:$0xff]  ;;  %290 = vst.msk [vmem:[#allocation3 + $0x28] sm:$0xff] %vm284_vm1, %v3897_v22  ;;  %p3810_p10 = por %p3809_p9, %p3808_p7 }
  0x4d   : > { %3714 = vmatprep.subr.mxu1 %v319_v27  ;;  %3359 = vmatprep.subr.mxu0 %v319_v27  ;;  %v2929_v53 = vld [vmem:[%s4994_s1 + $0x48] sm:$0xff]  ;;  %v2928_v56 = vld [vmem:[%s4994_s1 + $0x40] sm:$0xff]  ;;  %v4184_v57 = vld [vmem:[#allocation2 + $0x38] sm:$0xff]  ;;  %291 = vst.msk [vmem:[#allocation3 + $0x30] sm:$0xff] %vm284_vm1, %v3897_v22 }
  0x4e   : > { %3722 = vmatpush3.msra.mxu1 %v319_v27  ;;  %3360 = vmatpush3.msra.mxu0 %v319_v27  ;;  %v2955_v58 = vld [vmem:[%s4994_s1 + $0x98] sm:$0xff]  ;;  %v2954_v59 = vld [vmem:[%s4994_s1 + $0x90] sm:$0xff]  ;;  %v2953_v61 = vld [vmem:[%s4994_s1 + $0x88] sm:$0xff]  ;;  %292 = vst.msk [vmem:[#allocation3 + $0x38] sm:$0xff] %vm284_vm1, %v3897_v22  ;;  %p3811_p11 = pnand %p3810_p10, %p3804_p6 }
  0x4f   : > { %3715 = vmatprep.subr.mxu1 %v318_v28  ;;  %3361 = vmatprep.subr.mxu0 %v318_v28  ;;  %v2983_v60 = vld [vmem:[%s4994_s1 + $0xf8] sm:$0xff]  ;;  %v2952_v62 = vld [vmem:[%s4994_s1 + $0x80] sm:$0xff]  ;;  %v2982_v63 = vld [vmem:[%s4994_s1 + $0xf0] sm:$0xff]  ;;  %295 = vst.msk [vmem:[#allocation3 + $0x50] sm:$0xff] %vm284_vm1, %v3897_v22 }
  0x50   : > { %3723 = vmatpush3.msra.mxu1 %v318_v28  ;;  %3362 = vmatpush3.msra.mxu0 %v318_v28  ;;  %v3007_v0 = vld [vmem:[%s4994_s1 + $0x138] sm:$0xff]  ;;  %v2981_v1 = vld [vmem:[%s4994_s1 + $0xe8] sm:$0xff]  ;;  %v3006_v2 = vld [vmem:[%s4994_s1 + $0x130] sm:$0xff]  ;;  %296 = vst.msk [vmem:[#allocation3 + $0x58] sm:$0xff] %vm284_vm1, %v3897_v22 }
  0x51   : > { %3716 = vmatprep.subr.mxu1 %v317_v29  ;;  %3377 = vmatprep.mubr.msk.f32.mxu1 %vm231_vm0, %v4090_v30  ;;  %v2980_v3 = vld [vmem:[%s4994_s1 + $0xe0] sm:$0xff]  ;;  %v3005_v4 = vld [vmem:[%s4994_s1 + $0x128] sm:$0xff]  ;;  %v2979_v5 = vld [vmem:[%s4994_s1 + $0xd8] sm:$0xff]  ;;  %297 = vst.msk [vmem:[#allocation3 + $0x60] sm:$0xff] %vm284_vm1, %v3897_v22 }
  0x52   : > { %3724 = vmatpush3.msra.mxu1 %v317_v29  ;;  %3363 = vmatprep.subr.mxu0 %v317_v29  ;;  %v3004_v6 = vld [vmem:[%s4994_s1 + $0x120] sm:$0xff]  ;;  %v2978_v7 = vld [vmem:[%s4994_s1 + $0xd0] sm:$0xff]  ;;  %v3003_v8 = vld [vmem:[%s4994_s1 + $0x118] sm:$0xff]  ;;  %298 = vst.msk [vmem:[#allocation3 + $0x68] sm:$0xff] %vm284_vm1, %v3897_v22 }
  0x53   : > { %3378 = vmatmul.mubr.msk.f32.vlgmr.msra.gmra.mxu1 %vm231_vm0, %v4092_v31  ;;  %3389 = vmatprep.subr.mxu1 %v2935_v32  ;;  %v2977_v9 = vld [vmem:[%s4994_s1 + $0xc8] sm:$0xff]  ;;  %v3002_v10 = vld [vmem:[%s4994_s1 + $0x110] sm:$0xff]  ;;  %v2976_v11 = vld [vmem:[%s4994_s1 + $0xc0] sm:$0xff]  ;;  %299 = vst.msk [vmem:[#allocation3 + $0x70] sm:$0xff] %vm284_vm1, %v3897_v22 }
  0x54   : > { %3364 = vmatpush3.msra.mxu0 %v317_v29  ;;  %3365 = vmatprep.mubr.msk.f32.mxu0 %vm231_vm0, %v4099_v33  ;;  %v3001_v12 = vld [vmem:[%s4994_s1 + $0x108] sm:$0xff]  ;;  %v3031_v13 = vld [vmem:[%s4994_s1 + $0x178] sm:$0xff]  ;;  %v3000_v14 = vld [vmem:[%s4994_s1 + $0x100] sm:$0xff]  ;;  %300 = vst.msk [vmem:[#allocation3 + $0x78] sm:$0xff] %vm284_vm1, %v3897_v22 }
  0x55   : > { %3390 = vmatpush3.msra.mxu1 %v2935_v32  ;;  %3366 = vmatmul.mubr.msk.f32.vlgmr.msra.gmra.mxu0 %vm231_vm0, %v4101_v34  ;;  %v3030_v15 = vld [vmem:[%s4994_s1 + $0x170] sm:$0xff]  ;;  %v3055_v16 = vld [vmem:[%s4994_s1 + $0x1b8] sm:$0xff]  ;;  %v3029_v17 = vld [vmem:[%s4994_s1 + $0x168] sm:$0xff] }
  0x56   : > { %3391 = vmatprep.subr.mxu1 %v2934_v35  ;;  %3380 = vmatprep.mubr.msk.f32.mxu1 %vm231_vm0, %v4108_v36  ;;  %v3054_v18 = vld [vmem:[%s4994_s1 + $0x1b0] sm:$0xff]  ;;  %v3028_v19 = vld [vmem:[%s4994_s1 + $0x160] sm:$0xff]  ;;  %v3053_v20 = vld [vmem:[%s4994_s1 + $0x1a8] sm:$0xff] }
  0x57   : > { %3392 = vmatpush3.msra.mxu1 %v2934_v35  ;;  %3368 = vmatprep.mubr.msk.f32.mxu0 %vm231_vm0, %v4112_v37  ;;  %v3027_v21 = vld [vmem:[%s4994_s1 + $0x158] sm:$0xff]  ;;  %v3052_v23 = vld [vmem:[%s4994_s1 + $0x1a0] sm:$0xff]  ;;  %v3026_v24 = vld [vmem:[%s4994_s1 + $0x150] sm:$0xff] }
  0x58   : > { %3381 = vmatmul.mubr.msk.f32.gmra.mxu1 %vm231_vm0, %v4116_v38  ;;  %3393 = vmatprep.subr.mxu1 %v2933_v39  ;;  %v3051_v25 = vld [vmem:[%s4994_s1 + $0x198] sm:$0xff]  ;;  %v3025_v26 = vld [vmem:[%s4994_s1 + $0x148] sm:$0xff]  ;;  %v4414_v27 = vld [vmem:[#allocation2 + $0x80] sm:$0xff] }
  0x59   : > { %3394 = vmatpush3.msra.mxu1 %v2933_v39  ;;  %3369 = vmatmul.mubr.msk.f32.gmra.mxu0 %vm231_vm0, %v4123_v40  ;;  %v3050_v28 = vld [vmem:[%s4994_s1 + $0x190] sm:$0xff]  ;;  %v4421_v29 = vld [vmem:[#allocation2 + $0x88] sm:$0xff]  ;;  %v3024_v32 = vld [vmem:[%s4994_s1 + $0x140] sm:$0xff] }
  0x5a   : > { %3395 = vmatprep.subr.mxu1 %v2932_v41  ;;  %3429 = vmatprep.subr.mxu0 %v2959_v42  ;;  %v3048_v35 = vld [vmem:[%s4994_s1 + $0x180] sm:$0xff]  ;;  %v3103_v39 = vld [vmem:[%s4994_s1 + $0x238] sm:$0xff] }
  0x5b   : > { %3383 = vmatprep.mubr.msk.f32.mxu1 %vm231_vm0, %v4135_v43  ;;  %3396 = vmatpush3.msra.mxu1 %v2932_v41  ;;  %v3102_v41 = vld [vmem:[%s4994_s1 + $0x230] sm:$0xff] }
  0x5c   : > { %3430 = vmatpush3.msra.mxu0 %v2959_v42  ;;  %3384 = vmatmul.mubr.msk.f32.gmra.mxu1 %vm231_vm0, %v4139_v44  ;;  %v3076_v42 = vld [vmem:[%s4994_s1 + $0x1e0] sm:$0xff] }
  0x5d   : > { %3397 = vmatprep.subr.mxu1 %v2931_v45  ;;  %3431 = vmatprep.subr.mxu0 %v2958_v46 }
  0x5e   : > { %3371 = vmatprep.mubr.msk.f32.mxu0 %vm231_vm0, %v4149_v47  ;;  %3398 = vmatpush3.msra.mxu1 %v2931_v45  ;;  %v3101_v45 = vld [vmem:[%s4994_s1 + $0x228] sm:$0xff] }
  0x5f   : > { %3432 = vmatpush3.msra.mxu0 %v2958_v46  ;;  %3399 = vmatprep.subr.mxu1 %v2930_v48  ;;  %v3075_v46 = vld [vmem:[%s4994_s1 + $0x1d8] sm:$0xff] }
  0x60   : > { %3372 = vmatmul.mubr.msk.f32.gmra.mxu0 %vm231_vm0, %v4156_v49  ;;  %3433 = vmatprep.subr.mxu0 %v2957_v50 }
  0x61   : > { %3386 = vmatprep.mubr.msk.f32.mxu1 %vm231_vm0, %v4163_v51  ;;  %3400 = vmatpush3.msra.mxu1 %v2930_v48  ;;  %v3100_v48 = vld [vmem:[%s4994_s1 + $0x220] sm:$0xff] }
  0x62   : > { %3434 = vmatpush3.msra.mxu0 %v2957_v50  ;;  %3387 = vmatmul.mubr.msk.f32.gmra.mxu1 %vm231_vm0, %v4165_v52  ;;  %v3074_v50 = vld [vmem:[%s4994_s1 + $0x1d0] sm:$0xff] }
  0x63   : > { %3401 = vmatprep.subr.mxu1 %v2929_v53  ;;  %3435 = vmatprep.subr.mxu0 %v2956_v54 }
  0x64   : > { %3374 = vmatprep.mubr.msk.f32.mxu0 %vm231_vm0, %v4177_v55  ;;  %3402 = vmatpush3.msra.mxu1 %v2929_v53  ;;  %v3099_v53 = vld [vmem:[%s4994_s1 + $0x218] sm:$0xff] }
  0x65   : > { %3436 = vmatpush3.msra.mxu0 %v2956_v54  ;;  %3403 = vmatprep.subr.mxu1 %v2928_v56  ;;  %v3073_v54 = vld [vmem:[%s4994_s1 + $0x1c8] sm:$0xff] }
  0x66   : > { %3375 = vmatmul.mubr.msk.f32.gmra.mxu0 %vm231_vm0, %v4184_v57  ;;  %3437 = vmatprep.subr.mxu0 %v2955_v58 }
  0x67   : > { %3404 = vmatpush3.msra.mxu1 %v2928_v56  ;;  %3405 = vmatprep.mubr.msk.f32.mxu1 %vm231_vm0, %v4099_v33  ;;  %v3098_v56 = vld [vmem:[%s4994_s1 + $0x210] sm:$0xff] }
  0x68   : > { %3438 = vmatpush3.msra.mxu0 %v2955_v58  ;;  %3406 = vmatmul.mubr.msk.f32.vlgmr.msra.gmra.mxu1 %vm231_vm0, %v4101_v34  ;;  %v3072_v58 = vld [vmem:[%s4994_s1 + $0x1c0] sm:$0xff] }
  0x69   : > { %3439 = vmatprep.subr.mxu0 %v2954_v59  ;;  %3469 = vmatprep.subr.mxu1 %v2983_v60 }
  0x6a   : > { %3440 = vmatpush3.msra.mxu0 %v2954_v59  ;;  %3470 = vmatpush3.msra.mxu1 %v2983_v60  ;;  %v3097_v59 = vld [vmem:[%s4994_s1 + $0x208] sm:$0xff]  ;;  %v1913_v60 = vld [vmem:[#allocation2 + $0x90] sm:$0xff] }
  0x6b   : > { %3441 = vmatprep.subr.mxu0 %v2953_v61  ;;  %3408 = vmatprep.mubr.msk.f32.mxu1 %vm231_vm0, %v4112_v37 }
  0x6c   : > { %3442 = vmatpush3.msra.mxu0 %v2953_v61  ;;  %3409 = vmatmul.mubr.msk.f32.gmra.mxu1 %vm231_vm0, %v4123_v40  ;;  %v1914_v61 = vld [vmem:[#allocation2 + $0x98] sm:$0xff] }
  0x6d   : > { %3443 = vmatprep.subr.mxu0 %v2952_v62  ;;  %3471 = vmatprep.subr.mxu1 %v2982_v63 }
  0x6e   : > { %3444 = vmatpush3.msra.mxu0 %v2952_v62  ;;  %3445 = vmatprep.mubr.msk.f32.mxu0 %vm231_vm0, %v4099_v33  ;;  %v3049_v33 = vld [vmem:[%s4994_s1 + $0x188] sm:$0xff]  ;;  %v3096_v62 = vld [vmem:[%s4994_s1 + $0x200] sm:$0xff] }
  0x6f   : > { %3472 = vmatpush3.msra.mxu1 %v2982_v63  ;;  %3446 = vmatmul.mubr.msk.f32.vlgmr.msra.gmra.mxu0 %vm231_vm0, %v4101_v34  ;;  %v3079_v34 = vld [vmem:[%s4994_s1 + $0x1f8] sm:$0xff]  ;;  %v583_v63 = vld [vmem:[#allocation3] sm:$0xff] }
  0x70   : > { %3411 = vmatprep.mubr.msk.f32.mxu1 %vm231_vm0, %v4149_v47  ;;  %3509 = vmatprep.subr.mxu0 %v3007_v0 }
  0x71   : > { %3412 = vmatmul.mubr.msk.f32.gmra.mxu1 %vm231_vm0, %v4156_v49  ;;  %3473 = vmatprep.subr.mxu1 %v2981_v1 }
  0x72   : > { %3510 = vmatpush3.msra.mxu0 %v3007_v0  ;;  %3448 = vmatprep.mubr.msk.f32.mxu0 %vm231_vm0, %v4112_v37  ;;  %v584_v0 = vld [vmem:[#allocation3 + $0x8] sm:$0xff] }
  0x73   : > { %3474 = vmatpush3.msra.mxu1 %v2981_v1  ;;  %3449 = vmatmul.mubr.msk.f32.gmra.mxu0 %vm231_vm0, %v4123_v40 }
  0x74   : > { %3414 = vmatprep.mubr.msk.f32.mxu1 %vm231_vm0, %v4177_v55  ;;  %3511 = vmatprep.subr.mxu0 %v3006_v2 }
  0x75   : > { %3415 = vmatmul.mubr.msk.f32.gmra.mxu1 %vm231_vm0, %v4184_v57  ;;  %3475 = vmatprep.subr.mxu1 %v2980_v3 }
  0x76   : > { %3512 = vmatpush3.msra.mxu0 %v3006_v2  ;;  %3451 = vmatprep.mubr.msk.f32.mxu0 %vm231_vm0, %v4149_v47 }
  0x77   : > { %3476 = vmatpush3.msra.mxu1 %v2980_v3  ;;  %3452 = vmatmul.mubr.msk.f32.gmra.mxu0 %vm231_vm0, %v4156_v49 }
  0x78   : > { %3417 = vmatprep.mubr.msk.f32.mxu1 %vm231_vm0, %v4090_v30  ;;  %3513 = vmatprep.subr.mxu0 %v3005_v4 }
  0x79   : > { %3418 = vmatmul.mubr.msk.f32.gmra.mxu1 %vm231_vm0, %v4092_v31  ;;  %3477 = vmatprep.subr.mxu1 %v2979_v5 }
  0x7a   : > { %3514 = vmatpush3.msra.mxu0 %v3005_v4  ;;  %3454 = vmatprep.mubr.msk.f32.mxu0 %vm231_vm0, %v4177_v55 }
  0x7b   : > { %3478 = vmatpush3.msra.mxu1 %v2979_v5  ;;  %3455 = vmatmul.mubr.msk.f32.gmra.mxu0 %vm231_vm0, %v4184_v57 }
  0x7c   : > { %3420 = vmatprep.mubr.msk.f32.mxu1 %vm231_vm0, %v4108_v36  ;;  %3515 = vmatprep.subr.mxu0 %v3004_v6 }
  0x7d   : > { %3421 = vmatmul.mubr.msk.f32.gmra.mxu1 %vm231_vm0, %v4116_v38  ;;  %3479 = vmatprep.subr.mxu1 %v2978_v7 }
  0x7e   : > { %3516 = vmatpush3.msra.mxu0 %v3004_v6  ;;  %3457 = vmatprep.mubr.msk.f32.mxu0 %vm231_vm0, %v4090_v30 }
  0x7f   : > { %3480 = vmatpush3.msra.mxu1 %v2978_v7  ;;  %3458 = vmatmul.mubr.msk.f32.gmra.mxu0 %vm231_vm0, %v4092_v31 }
  0x80   : > { %3423 = vmatprep.mubr.msk.f32.mxu1 %vm231_vm0, %v4135_v43  ;;  %3517 = vmatprep.subr.mxu0 %v3003_v8 }
  0x81   : > { %3424 = vmatmul.mubr.msk.f32.gmra.mxu1 %vm231_vm0, %v4139_v44  ;;  %3481 = vmatprep.subr.mxu1 %v2977_v9 }
  0x82   : > { %3518 = vmatpush3.msra.mxu0 %v3003_v8  ;;  %3460 = vmatprep.mubr.msk.f32.mxu0 %vm231_vm0, %v4108_v36 }
  0x83   : > { %3482 = vmatpush3.msra.mxu1 %v2977_v9  ;;  %3461 = vmatmul.mubr.msk.f32.gmra.mxu0 %vm231_vm0, %v4116_v38 }
  0x84   : > { %3426 = vmatprep.mubr.msk.f32.mxu1 %vm231_vm0, %v4163_v51  ;;  %3519 = vmatprep.subr.mxu0 %v3002_v10 }
  0x85   : > { %3427 = vmatmul.mubr.msk.f32.gmra.mxu1 %vm231_vm0, %v4165_v52  ;;  %3483 = vmatprep.subr.mxu1 %v2976_v11 }
  0x86   : > { %3520 = vmatpush3.msra.mxu0 %v3002_v10  ;;  %3463 = vmatprep.mubr.msk.f32.mxu0 %vm231_vm0, %v4135_v43 }
  0x87   : > { %3484 = vmatpush3.msra.mxu1 %v2976_v11  ;;  %3464 = vmatmul.mubr.msk.f32.gmra.mxu0 %vm231_vm0, %v4139_v44 }
  0x88   : > { %3485 = vmatprep.mubr.msk.f32.mxu1 %vm231_vm0, %v4112_v37  ;;  %3521 = vmatprep.subr.mxu0 %v3001_v12 }
  0x89   : > { %3486 = vmatmul.mubr.msk.f32.vlgmr.msra.gmra.mxu1 %vm231_vm0, %v4123_v40  ;;  %3522 = vmatpush3.msra.mxu0 %v3001_v12 }
  0x8a   : > { %3549 = vmatprep.subr.mxu1 %v3031_v13  ;;  %3466 = vmatprep.mubr.msk.f32.mxu0 %vm231_vm0, %v4163_v51 }
  0x8b   : > { %3550 = vmatpush3.msra.mxu1 %v3031_v13  ;;  %3467 = vmatmul.mubr.msk.f32.gmra.mxu0 %vm231_vm0, %v4165_v52  ;;  %v593_v13 = vld [vmem:[#allocation3 + $0x50] sm:$0xff] }
  0x8c   : > { %3488 = vmatprep.mubr.msk.f32.mxu1 %vm231_vm0, %v4149_v47  ;;  %3523 = vmatprep.subr.mxu0 %v3000_v14 }
  0x8d   : > { %3489 = vmatmul.mubr.msk.f32.gmra.mxu1 %vm231_vm0, %v4156_v49  ;;  %3524 = vmatpush3.msra.mxu0 %v3000_v14  ;;  %v594_v14 = vld [vmem:[#allocation3 + $0x58] sm:$0xff] }
  0x8e   : > { %3551 = vmatprep.subr.mxu1 %v3030_v15  ;;  %3525 = vmatprep.mubr.msk.f32.mxu0 %vm231_vm0, %v4112_v37 }
  0x8f   : > { %3552 = vmatpush3.msra.mxu1 %v3030_v15  ;;  %3526 = vmatmul.mubr.msk.f32.vlgmr.msra.gmra.mxu0 %vm231_vm0, %v4123_v40 }
  0x90   : > { %3491 = vmatprep.mubr.msk.f32.mxu1 %vm231_vm0, %v4177_v55  ;;  %3589 = vmatprep.subr.mxu0 %v3055_v16 }
  0x91   : > { %3492 = vmatmul.mubr.msk.f32.gmra.mxu1 %vm231_vm0, %v4184_v57  ;;  %3553 = vmatprep.subr.mxu1 %v3029_v17 }
  0x92   : > { %3590 = vmatpush3.msra.mxu0 %v3055_v16  ;;  %3528 = vmatprep.mubr.msk.f32.mxu0 %vm231_vm0, %v4149_v47 }
  0x93   : > { %3554 = vmatpush3.msra.mxu1 %v3029_v17  ;;  %3529 = vmatmul.mubr.msk.f32.gmra.mxu0 %vm231_vm0, %v4156_v49  ;;  %v585_v17 = vld [vmem:[#allocation3 + $0x10] sm:$0xff] }
  0x94   : > { %3494 = vmatprep.mubr.msk.f32.mxu1 %vm231_vm0, %v4090_v30  ;;  %3591 = vmatprep.subr.mxu0 %v3054_v18 }
  0x95   : > { %3495 = vmatmul.mubr.msk.f32.gmra.mxu1 %vm231_vm0, %v4092_v31  ;;  %3555 = vmatprep.subr.mxu1 %v3028_v19 }
  0x96   : > { %3592 = vmatpush3.msra.mxu0 %v3054_v18  ;;  %3531 = vmatprep.mubr.msk.f32.mxu0 %vm231_vm0, %v4177_v55  ;;  %v586_v18 = vld [vmem:[#allocation3 + $0x18] sm:$0xff] }
  0x97   : > { %3556 = vmatpush3.msra.mxu1 %v3028_v19  ;;  %3532 = vmatmul.mubr.msk.f32.gmra.mxu0 %vm231_vm0, %v4184_v57 }
  0x98   : > { %3497 = vmatprep.mubr.msk.f32.mxu1 %vm231_vm0, %v4108_v36  ;;  %3593 = vmatprep.subr.mxu0 %v3053_v20 }
  0x99   : > { %3498 = vmatmul.mubr.msk.f32.gmra.mxu1 %vm231_vm0, %v4116_v38  ;;  %3557 = vmatprep.subr.mxu1 %v3027_v21 }
  0x9a   : > { %3594 = vmatpush3.msra.mxu0 %v3053_v20  ;;  %3534 = vmatprep.mubr.msk.f32.mxu0 %vm231_vm0, %v4090_v30 }
  0x9b   : > { %3558 = vmatpush3.msra.mxu1 %v3027_v21  ;;  %3535 = vmatmul.mubr.msk.f32.gmra.mxu0 %vm231_vm0, %v4092_v31 }
  0x9c   : > { %3500 = vmatprep.mubr.msk.f32.mxu1 %vm231_vm0, %v4135_v43  ;;  %3595 = vmatprep.subr.mxu0 %v3052_v23 }
  0x9d   : > { %3501 = vmatmul.mubr.msk.f32.gmra.mxu1 %vm231_vm0, %v4139_v44  ;;  %3559 = vmatprep.subr.mxu1 %v3026_v24 }
  0x9e   : > { %3596 = vmatpush3.msra.mxu0 %v3052_v23  ;;  %3537 = vmatprep.mubr.msk.f32.mxu0 %vm231_vm0, %v4108_v36 }
  0x9f   : > { %3560 = vmatpush3.msra.mxu1 %v3026_v24  ;;  %3538 = vmatmul.mubr.msk.f32.gmra.mxu0 %vm231_vm0, %v4116_v38 }
  0xa0   : > { %3503 = vmatprep.mubr.msk.f32.mxu1 %vm231_vm0, %v4163_v51  ;;  %3597 = vmatprep.subr.mxu0 %v3051_v25 }
  0xa1   : > { %3504 = vmatmul.mubr.msk.f32.gmra.mxu1 %vm231_vm0, %v4165_v52  ;;  %3561 = vmatprep.subr.mxu1 %v3025_v26 }
  0xa2   : > { %3598 = vmatpush3.msra.mxu0 %v3051_v25  ;;  %3540 = vmatprep.mubr.msk.f32.mxu0 %vm231_vm0, %v4135_v43 }
  0xa3   : > { %3562 = vmatpush3.msra.mxu1 %v3025_v26  ;;  %3541 = vmatmul.mubr.msk.f32.gmra.mxu0 %vm231_vm0, %v4139_v44 }
  0xa4   : > { %3506 = vmatprep.mubr.msk.f32.mxu1 %vm231_vm0, %v4414_v27  ;;  %3599 = vmatprep.subr.mxu0 %v3050_v28 }
  0xa5   : > { %3507 = vmatmul.mubr.msk.f32.gmra.mxu1 %vm231_vm0, %v4421_v29  ;;  %3563 = vmatprep.subr.mxu1 %v3024_v32 }
  0xa6   : > { %3600 = vmatpush3.msra.mxu0 %v3050_v28  ;;  %3543 = vmatprep.mubr.msk.f32.mxu0 %vm231_vm0, %v4163_v51 }
  0xa7   : > { %3564 = vmatpush3.msra.mxu1 %v3024_v32  ;;  %3544 = vmatmul.mubr.msk.f32.gmra.mxu0 %vm231_vm0, %v4165_v52 }
  0xa8   : > { %3565 = vmatprep.mubr.msk.f32.mxu1 %vm231_vm0, %v4112_v37  ;;  %3601 = vmatprep.subr.mxu0 %v3049_v33  ;;  %v3078_v37 = vld [vmem:[%s4994_s1 + $0x1f0] sm:$0xff] }
  0xa9   : > { %3566 = vmatmul.mubr.msk.f32.vlgmr.msra.gmra.mxu1 %vm231_vm0, %v4123_v40  ;;  %3602 = vmatpush3.msra.mxu0 %v3049_v33  ;;  %v3077_v40 = vld [vmem:[%s4994_s1 + $0x1e8] sm:$0xff]  ;;  %v595_v33 = vld [vmem:[#allocation3 + $0x60] sm:$0xff] }
  0xaa   : > { %3629 = vmatprep.subr.mxu1 %v3079_v34  ;;  %3546 = vmatprep.mubr.msk.f32.mxu0 %vm231_vm0, %v4414_v27 }
  0xab   : > { %3630 = vmatpush3.msra.mxu1 %v3079_v34  ;;  %3547 = vmatmul.mubr.msk.f32.gmra.mxu0 %vm231_vm0, %v4421_v29  ;;  %v596_v34 = vld [vmem:[#allocation3 + $0x68] sm:$0xff] }
  0xac   : > { %3568 = vmatprep.mubr.msk.f32.mxu1 %vm231_vm0, %v4149_v47  ;;  %3603 = vmatprep.subr.mxu0 %v3048_v35 }
  0xad   : > { %3569 = vmatmul.mubr.msk.f32.gmra.mxu1 %vm231_vm0, %v4156_v49  ;;  %3604 = vmatpush3.msra.mxu0 %v3048_v35 }
  0xae   : > { %3631 = vmatprep.subr.mxu1 %v3078_v37  ;;  %3605 = vmatprep.mubr.msk.f32.mxu0 %vm231_vm0, %v4149_v47 }
  0xaf   : > { %3632 = vmatpush3.msra.mxu1 %v3078_v37  ;;  %3606 = vmatmul.mubr.msk.f32.vlgmr.msra.gmra.mxu0 %vm231_vm0, %v4156_v49 }
  0xb0   : > { %3571 = vmatprep.mubr.msk.f32.mxu1 %vm231_vm0, %v4177_v55  ;;  %3669 = vmatprep.subr.mxu0 %v3103_v39 }
  0xb1   : > { %3572 = vmatmul.mubr.msk.f32.gmra.mxu1 %vm231_vm0, %v4184_v57  ;;  %3633 = vmatprep.subr.mxu1 %v3077_v40 }
  0xb2   : > { %3670 = vmatpush3.msra.mxu0 %v3103_v39  ;;  %3608 = vmatprep.mubr.msk.f32.mxu0 %vm231_vm0, %v4177_v55 }
  0xb3   : > { %3634 = vmatpush3.msra.mxu1 %v3077_v40  ;;  %3609 = vmatmul.mubr.msk.f32.gmra.mxu0 %vm231_vm0, %v4184_v57 }
  0xb4   : > { %3574 = vmatprep.mubr.msk.f32.mxu1 %vm231_vm0, %v4090_v30  ;;  %3671 = vmatprep.subr.mxu0 %v3102_v41 }
  0xb5   : > { %3575 = vmatmul.mubr.msk.f32.gmra.mxu1 %vm231_vm0, %v4092_v31  ;;  %3635 = vmatprep.subr.mxu1 %v3076_v42 }
  0xb6   : > { %3672 = vmatpush3.msra.mxu0 %v3102_v41  ;;  %3611 = vmatprep.mubr.msk.f32.mxu0 %vm231_vm0, %v4090_v30 }
  0xb7   : > { %3636 = vmatpush3.msra.mxu1 %v3076_v42  ;;  %3612 = vmatmul.mubr.msk.f32.gmra.mxu0 %vm231_vm0, %v4092_v31 }
  0xb8   : > { %3577 = vmatprep.mubr.msk.f32.mxu1 %vm231_vm0, %v4108_v36  ;;  %3673 = vmatprep.subr.mxu0 %v3101_v45 }
  0xb9   : > { %3578 = vmatmul.mubr.msk.f32.gmra.mxu1 %vm231_vm0, %v4116_v38  ;;  %3637 = vmatprep.subr.mxu1 %v3075_v46 }
  0xba   : > { %3674 = vmatpush3.msra.mxu0 %v3101_v45  ;;  %3614 = vmatprep.mubr.msk.f32.mxu0 %vm231_vm0, %v4108_v36 }
  0xbb   : > { %3638 = vmatpush3.msra.mxu1 %v3075_v46  ;;  %3615 = vmatmul.mubr.msk.f32.gmra.mxu0 %vm231_vm0, %v4116_v38 }
  0xbc   : > { %3580 = vmatprep.mubr.msk.f32.mxu1 %vm231_vm0, %v4135_v43  ;;  %3675 = vmatprep.subr.mxu0 %v3100_v48 }
  0xbd   : > { %3581 = vmatmul.mubr.msk.f32.gmra.mxu1 %vm231_vm0, %v4139_v44  ;;  %3639 = vmatprep.subr.mxu1 %v3074_v50 }
  0xbe   : > { %3676 = vmatpush3.msra.mxu0 %v3100_v48  ;;  %3617 = vmatprep.mubr.msk.f32.mxu0 %vm231_vm0, %v4135_v43 }
  0xbf   : > { %3640 = vmatpush3.msra.mxu1 %v3074_v50  ;;  %3618 = vmatmul.mubr.msk.f32.gmra.mxu0 %vm231_vm0, %v4139_v44  ;;  %v587_v50 = vld [vmem:[#allocation3 + $0x20] sm:$0xff] }
  0xc0   : > { %3583 = vmatprep.mubr.msk.f32.mxu1 %vm231_vm0, %v4163_v51  ;;  %3677 = vmatprep.subr.mxu0 %v3099_v53 }
  0xc1   : > { %3584 = vmatmul.mubr.msk.f32.gmra.mxu1 %vm231_vm0, %v4165_v52  ;;  %3641 = vmatprep.subr.mxu1 %v3073_v54 }
  0xc2   : > { %3678 = vmatpush3.msra.mxu0 %v3099_v53  ;;  %3620 = vmatprep.mubr.msk.f32.mxu0 %vm231_vm0, %v4163_v51  ;;  %v588_v53 = vld [vmem:[#allocation3 + $0x28] sm:$0xff] }
  0xc3   : > { %3642 = vmatpush3.msra.mxu1 %v3073_v54  ;;  %3621 = vmatmul.mubr.msk.f32.gmra.mxu0 %vm231_vm0, %v4165_v52 }
  0xc4   : > { %3586 = vmatprep.mubr.msk.f32.mxu1 %vm231_vm0, %v4414_v27  ;;  %3679 = vmatprep.subr.mxu0 %v3098_v56 }
  0xc5   : > { %3587 = vmatmul.mubr.msk.f32.gmra.mxu1 %vm231_vm0, %v4421_v29  ;;  %3643 = vmatprep.subr.mxu1 %v3072_v58 }
  0xc6   : > { %3680 = vmatpush3.msra.mxu0 %v3098_v56  ;;  %3623 = vmatprep.mubr.msk.f32.mxu0 %vm231_vm0, %v4414_v27 }
  0xc7   : > { %3644 = vmatpush3.msra.mxu1 %v3072_v58  ;;  %3624 = vmatmul.mubr.msk.f32.gmra.mxu0 %vm231_vm0, %v4421_v29 }
  0xc8   : > { %3645 = vmatprep.mubr.msk.f32.mxu1 %vm231_vm0, %v4149_v47  ;;  %3681 = vmatprep.subr.mxu0 %v3097_v59 }
  0xc9   : > { %3646 = vmatmul.mubr.msk.f32.vlgmr.msra.gmra.mxu1 %vm231_vm0, %v4156_v49  ;;  %3682 = vmatpush3.msra.mxu0 %v3097_v59 }
  0xca   : > { %3626 = vmatprep.mubr.msk.f32.mxu0 %vm231_vm0, %v1913_v60  ;;  %3648 = vmatprep.mubr.msk.f32.mxu1 %vm231_vm0, %v4177_v55 }
  0xcb   : > { %3627 = vmatmul.mubr.msk.f32.gmra.mxu0 %vm231_vm0, %v1914_v61  ;;  %3683 = vmatprep.subr.mxu0 %v3096_v62 }
  0xcc   : > { %3684 = vmatpush3.msra.mxu0 %v3096_v62  ;;  %3685 = vmatprep.mubr.msk.f32.mxu0 %vm231_vm0, %v4149_v47  ;;  %v591_v47 = vld [vmem:[#allocation3 + $0x40] sm:$0xff]  ;;  %v598_v62 = vld [vmem:[#allocation3 + $0x78] sm:$0xff] }
  0xcd   : > { %3649 = vmatmul.mubr.msk.f32.gmra.mxu1 %vm231_vm0, %v4184_v57 }
  0xce   : > { %3651 = vmatprep.mubr.msk.f32.mxu1 %vm231_vm0, %v4090_v30 }
  0xcf   : > { %3686 = vmatmul.mubr.msk.f32.vlgmr.msra.gmra.mxu0 %vm231_vm0, %v4156_v49  ;;  %v592_v49 = vld [vmem:[#allocation3 + $0x48] sm:$0xff] }
  0xd0   : > { %3688 = vmatprep.mubr.msk.f32.mxu0 %vm231_vm0, %v4177_v55 }
  0xd1   : > { %3652 = vmatmul.mubr.msk.f32.gmra.mxu1 %vm231_vm0, %v4092_v31 }
  0xd2   : > { %3654 = vmatprep.mubr.msk.f32.mxu1 %vm231_vm0, %v4108_v36 }
  0xd3   : > { %3689 = vmatmul.mubr.msk.f32.gmra.mxu0 %vm231_vm0, %v4184_v57 }
  0xd4   : > { %3691 = vmatprep.mubr.msk.f32.mxu0 %vm231_vm0, %v4090_v30 }
  0xd5   : > { %3655 = vmatmul.mubr.msk.f32.gmra.mxu1 %vm231_vm0, %v4116_v38 }
  0xd6   : > { %3657 = vmatprep.mubr.msk.f32.mxu1 %vm231_vm0, %v4135_v43 }
  0xd7   : > { %3692 = vmatmul.mubr.msk.f32.gmra.mxu0 %vm231_vm0, %v4092_v31 }
  0xd8   : > { %3694 = vmatprep.mubr.msk.f32.mxu0 %vm231_vm0, %v4108_v36 }
  0xd9   : > { %3658 = vmatmul.mubr.msk.f32.gmra.mxu1 %vm231_vm0, %v4139_v44 }
  0xda   : > { %3660 = vmatprep.mubr.msk.f32.mxu1 %vm231_vm0, %v4163_v51 }
  0xdb   : > { %3695 = vmatmul.mubr.msk.f32.gmra.mxu0 %vm231_vm0, %v4116_v38 }
  0xdc   : > { %3697 = vmatprep.mubr.msk.f32.mxu0 %vm231_vm0, %v4135_v43 }
  0xdd   : > { %3661 = vmatmul.mubr.msk.f32.gmra.mxu1 %vm231_vm0, %v4165_v52 }
  0xde   : > { %3663 = vmatprep.mubr.msk.f32.mxu1 %vm231_vm0, %v4414_v27 }
  0xdf   : > { %3698 = vmatmul.mubr.msk.f32.gmra.mxu0 %vm231_vm0, %v4139_v44 }
  0xe0   : > { %3700 = vmatprep.mubr.msk.f32.mxu0 %vm231_vm0, %v4163_v51 }
  0xe1   : > { %3664 = vmatmul.mubr.msk.f32.gmra.mxu1 %vm231_vm0, %v4421_v29 }
  0xe2   : > { %3666 = vmatprep.mubr.msk.f32.mxu1 %vm231_vm0, %v1913_v60 }
  0xe3   : > { %3701 = vmatmul.mubr.msk.f32.gmra.mxu0 %vm231_vm0, %v4165_v52 }
  0xe4   : > { %3703 = vmatprep.mubr.msk.f32.mxu0 %vm231_vm0, %v4414_v27 }
  0xe5   : > { %3667 = vmatmul.mubr.msk.f32.gmra.mxu1 %vm231_vm0, %v1914_v61 }
  0xe7   : > { %3704 = vmatmul.mubr.msk.f32.gmra.mxu0 %vm231_vm0, %v4421_v29 }
  0xe8   : > { %3706 = vmatprep.mubr.msk.f32.mxu0 %vm231_vm0, %v1913_v60 }
  0xeb   : > { %3707 = vmatmul.mubr.msk.f32.gmra.mxu0 %vm231_vm0, %v1914_v61  ;;  %v597_v61 = vld [vmem:[#allocation3 + $0x70] sm:$0xff] }
 0x113   : > { %v3379_v30 = vpop.f32.mrf.mxu1 }
 0x114   : > { %v548_v38 = vrot.slane %v3379_v30, 7 }
 0x115   : > { %v3367_v31 = vpop.f32.mrf.mxu0  ;;  %v479_v36 = vpop.f32.mrf.mxu1 }
 0x116   : > { %v536_v43 = vrot.slane %v3367_v31, 7  ;;  %v547_v44 = vrot.slane %v479_v36, 7 }
 0x117   : > { %v439_v51 = vpop.f32.mrf.mxu0 }
 0x118   : > { %v549_v52 = vsel %vm534_vm2, %v547_v44, %v548_v38  ;;  %v579_v55 = vsel %vm534_vm2, 0.0, %v547_v44  ;;  %v535_v57 = vrot.slane %v439_v51, 7  ;;  %v3382_v1 = vpop.f32.mrf.mxu1 }
 0x119   : > { %v607_v2 = vadd.f32 %v591_v47, %v579_v55  ;;  %v608_v3 = vadd.f32 %v592_v49, %v549_v52  ;;  %v3370_v4 = vpop.f32.mrf.mxu0  ;;  %v551_v11 = vrot.slane %v3382_v1, 7  ;;  %v590_v1 = vld [vmem:[#allocation3 + $0x38] sm:$0xff] }
 0x11a   : > { %v537_v5 = vsel %vm534_vm2, %v535_v57, %v536_v43  ;;  %v575_v6 = vsel %vm534_vm2, 0.0, %v535_v57  ;;  %v539_v7 = vrot.slane %v3370_v4, 7  ;;  %v489_v8 = vpop.f32.mrf.mxu1 }
 0x11b   : > { %623 = vst.msk [vmem:[#allocation3 + $0x40] sm:$0xff] %vm284_vm1, %v607_v2  ;;  %624 = vst.msk [vmem:[#allocation3 + $0x48] sm:$0xff] %vm284_vm1, %v608_v3  ;;  %v599_v9 = vadd.f32 %v583_v63, %v575_v6  ;;  %v600_v10 = vadd.f32 %v584_v0, %v537_v5  ;;  %v550_v12 = vrot.slane %v489_v8, 7  ;;  %v449_v15 = vpop.f32.mrf.mxu0  ;;  %v589_v0 = vld [vmem:[#allocation3 + $0x30] sm:$0xff] }
 0x11c   : > { %v538_v16 = vrot.slane %v449_v15, 7  ;;  %v3385_v19 = vpop.f32.mrf.mxu1 }
 0x11d   : > { %615 = vst.msk [vmem:[#allocation3] sm:$0xff] %vm284_vm1, %v599_v9  ;;  %616 = vst.msk [vmem:[#allocation3 + $0x8] sm:$0xff] %vm284_vm1, %v600_v10  ;;  %v552_v20 = vsel %vm534_vm2, %v550_v12, %v551_v11  ;;  %v580_v21 = vsel %vm534_vm2, 0.0, %v550_v12  ;;  %v554_v29 = vrot.slane %v3385_v19, 7 }
 0x11e   : > { %v609_v22 = vadd.f32 %v593_v13, %v580_v21  ;;  %v610_v23 = vadd.f32 %v594_v14, %v552_v20  ;;  %v540_v24 = vsel %vm534_vm2, %v538_v16, %v539_v7  ;;  %v576_v25 = vsel %vm534_vm2, 0.0, %v538_v16  ;;  %v499_v26 = vpop.f32.mrf.mxu1 }
 0x11f   : > { %v601_v27 = vadd.f32 %v585_v17, %v576_v25  ;;  %v602_v28 = vadd.f32 %v586_v18, %v540_v24  ;;  %v553_v32 = vrot.slane %v499_v26, 7 }
 0x120   : > { %625 = vst.msk [vmem:[#allocation3 + $0x50] sm:$0xff] %vm284_vm1, %v609_v22  ;;  %626 = vst.msk [vmem:[#allocation3 + $0x58] sm:$0xff] %vm284_vm1, %v610_v23  ;;  %v3373_v35 = vpop.f32.mrf.mxu0 }
 0x121   : > { %617 = vst.msk [vmem:[#allocation3 + $0x10] sm:$0xff] %vm284_vm1, %v601_v27  ;;  %618 = vst.msk [vmem:[#allocation3 + $0x18] sm:$0xff] %vm284_vm1, %v602_v28  ;;  %v542_v37 = vrot.slane %v3373_v35, 7  ;;  %v555_v39 = vsel %vm534_vm2, %v553_v32, %v554_v29  ;;  %v581_v40 = vsel %vm534_vm2, 0.0, %v553_v32 }
 0x122   : > { %v611_v41 = vadd.f32 %v595_v33, %v581_v40  ;;  %v612_v42 = vadd.f32 %v596_v34, %v555_v39  ;;  %v459_v45 = vpop.f32.mrf.mxu0  ;;  %v3388_v46 = vpop.f32.mrf.mxu1 }
 0x123   : > { %v541_v48 = vrot.slane %v459_v45, 7  ;;  %v557_v59 = vrot.slane %v3388_v46, 7 }
 0x124   : > { %627 = vst.msk [vmem:[#allocation3 + $0x60] sm:$0xff] %vm284_vm1, %v611_v41  ;;  %628 = vst.msk [vmem:[#allocation3 + $0x68] sm:$0xff] %vm284_vm1, %v612_v42  ;;  %v509_v54 = vpop.f32.mrf.mxu1  ;;  %v786_v38 = vld [vmem:[#allocation3 + $0x8] sm:$0xff]  ;;  %v785_v57 = vld [vmem:[#allocation3] sm:$0xff] }
 0x125   : > { %v543_v56 = vsel %vm534_vm2, %v541_v48, %v542_v37  ;;  %v577_v58 = vsel %vm534_vm2, 0.0, %v541_v48  ;;  %v556_v60 = vrot.slane %v509_v54, 7 }
 0x126   : > { %v603_v30 = vadd.f32 %v587_v50, %v577_v58  ;;  %v604_v31 = vadd.f32 %v588_v53, %v543_v56  ;;  %v3376_v36 = vpop.f32.mrf.mxu0 }
 0x127   : > { %v545_v43 = vrot.slane %v3376_v36, 7  ;;  %v558_v44 = vsel %vm534_vm2, %v556_v60, %v557_v59  ;;  %v582_v47 = vsel %vm534_vm2, 0.0, %v556_v60 }
 0x128   : > { %619 = vst.msk [vmem:[#allocation3 + $0x20] sm:$0xff] %vm284_vm1, %v603_v30  ;;  %620 = vst.msk [vmem:[#allocation3 + $0x28] sm:$0xff] %vm284_vm1, %v604_v31  ;;  %v613_v49 = vadd.f32 %v597_v61, %v582_v47  ;;  %v614_v51 = vadd.f32 %v598_v62, %v558_v44  ;;  %v469_v52 = vpop.f32.mrf.mxu0  ;;  %v3407_v55 = vpop.f32.mrf.mxu1  ;;  %v788_v4 = vld [vmem:[#allocation3 + $0x18] sm:$0xff]  ;;  %v787_v11 = vld [vmem:[#allocation3 + $0x10] sm:$0xff] }
 0x129   : > { %v544_v63 = vrot.slane %v469_v52, 7  ;;  %v802_v2 = vadd.f32 %v3407_v55, %v786_v38  ;;  %v794_v62 = vld [vmem:[#allocation3 + $0x48] sm:$0xff]  ;;  %v793_v47 = vld [vmem:[#allocation3 + $0x40] sm:$0xff] }
 0x12a   : > { %629 = vst.msk [vmem:[#allocation3 + $0x70] sm:$0xff] %vm284_vm1, %v613_v49  ;;  %630 = vst.msk [vmem:[#allocation3 + $0x78] sm:$0xff] %vm284_vm1, %v614_v51  ;;  %v706_v3 = vpop.f32.mrf.mxu1 }
 0x12b   : > { %v546_v5 = vsel %vm534_vm2, %v544_v63, %v545_v43  ;;  %v578_v6 = vsel %vm534_vm2, 0.0, %v544_v63  ;;  %818 = vst.msk [vmem:[#allocation3 + $0x8] sm:$0xff] %vm284_vm1, %v802_v2  ;;  %v801_v7 = vadd.f32 %v785_v57, %v706_v3 }
 0x12c   : > { %v605_v8 = vadd.f32 %v589_v0, %v578_v6  ;;  %v606_v9 = vadd.f32 %v590_v1, %v546_v5  ;;  %v3410_v10 = vpop.f32.mrf.mxu1  ;;  %v796_v1 = vld [vmem:[#allocation3 + $0x58] sm:$0xff] }
 0x12d   : > { %817 = vst.msk [vmem:[#allocation3] sm:$0xff] %vm284_vm1, %v801_v7  ;;  %v804_v12 = vadd.f32 %v3410_v10, %v788_v4 }
 0x12e   : > { %621 = vst.msk [vmem:[#allocation3 + $0x30] sm:$0xff] %vm284_vm1, %v605_v8  ;;  %622 = vst.msk [vmem:[#allocation3 + $0x38] sm:$0xff] %vm284_vm1, %v606_v9  ;;  %v716_v13 = vpop.f32.mrf.mxu1  ;;  %v795_v9 = vld [vmem:[#allocation3 + $0x50] sm:$0xff] }
 0x12f   : > { %820 = vst.msk [vmem:[#allocation3 + $0x18] sm:$0xff] %vm284_vm1, %v804_v12  ;;  %v803_v14 = vadd.f32 %v787_v11, %v716_v13  ;;  %v3447_v15 = vpop.f32.mrf.mxu0  ;;  %v790_v16 = vld [vmem:[#allocation3 + $0x28] sm:$0xff]  ;;  %v789_v20 = vld [vmem:[#allocation3 + $0x20] sm:$0xff] }
 0x130   : > { %v1005_v17 = vrot.slane %v3447_v15, 1 }
 0x131   : > { %819 = vst.msk [vmem:[#allocation3 + $0x10] sm:$0xff] %vm284_vm1, %v803_v14  ;;  %v3413_v18 = vpop.f32.mrf.mxu1  ;;  %v908_v19 = vpop.f32.mrf.mxu0 }
 0x132   : > { %v1044_v21 = vsel %vm1003_vm3, %v1005_v17, 0.0  ;;  %v1053_v22 = vld [vmem:[#allocation3 + $0x8] sm:$0xff]  ;;  %v806_v23 = vadd.f32 %v3413_v18, %v790_v16  ;;  %v1004_v24 = vrot.slane %v908_v19, 1 }
 0x133   : > { %v1069_v25 = vadd.f32 %v1053_v22, %v1044_v21  ;;  %v726_v26 = vpop.f32.mrf.mxu1  ;;  %v3450_v27 = vpop.f32.mrf.mxu0 }
 0x134   : > { %822 = vst.msk [vmem:[#allocation3 + $0x28] sm:$0xff] %vm284_vm1, %v806_v23  ;;  %v1006_v28 = vsel %vm1003_vm3, %v1004_v24, %v1005_v17  ;;  %v1052_v29 = vld [vmem:[#allocation3] sm:$0xff]  ;;  %v805_v32 = vadd.f32 %v789_v20, %v726_v26  ;;  %v1008_v33 = vrot.slane %v3450_v27, 1  ;;  %v798_v17 = vld [vmem:[#allocation3 + $0x68] sm:$0xff] }
 0x135   : > { %1085 = vst.msk [vmem:[#allocation3 + $0x8] sm:$0xff] %vm284_vm1, %v1069_v25  ;;  %v1068_v34 = vadd.f32 %v1052_v29, %v1006_v28  ;;  %v3416_v35 = vpop.f32.mrf.mxu1  ;;  %v792_v37 = vld [vmem:[#allocation3 + $0x38] sm:$0xff]  ;;  %v918_v39 = vpop.f32.mrf.mxu0  ;;  %v791_v40 = vld [vmem:[#allocation3 + $0x30] sm:$0xff]  ;;  %v797_v25 = vld [vmem:[#allocation3 + $0x60] sm:$0xff] }
 0x136   : > { %821 = vst.msk [vmem:[#allocation3 + $0x20] sm:$0xff] %vm284_vm1, %v805_v32  ;;  %v1045_v41 = vsel %vm1003_vm3, %v1008_v33, 0.0  ;;  %v1055_v42 = vld [vmem:[#allocation3 + $0x18] sm:$0xff]  ;;  %v808_v45 = vadd.f32 %v3416_v35, %v792_v37  ;;  %v1007_v46 = vrot.slane %v918_v39, 1 }
 0x137   : > { %1084 = vst.msk [vmem:[#allocation3] sm:$0xff] %vm284_vm1, %v1068_v34  ;;  %v1071_v48 = vadd.f32 %v1055_v42, %v1045_v41  ;;  %v736_v50 = vpop.f32.mrf.mxu1  ;;  %v3453_v53 = vpop.f32.mrf.mxu0  ;;  %v800_v35 = vld [vmem:[#allocation3 + $0x78] sm:$0xff] }
 0x138   : > { %824 = vst.msk [vmem:[#allocation3 + $0x38] sm:$0xff] %vm284_vm1, %v808_v45  ;;  %v1009_v54 = vsel %vm1003_vm3, %v1007_v46, %v1008_v33  ;;  %v1054_v56 = vld [vmem:[#allocation3 + $0x10] sm:$0xff]  ;;  %v807_v58 = vadd.f32 %v791_v40, %v736_v50  ;;  %v1011_v59 = vrot.slane %v3453_v53, 1 }
 0x139   : > { %1087 = vst.msk [vmem:[#allocation3 + $0x18] sm:$0xff] %vm284_vm1, %v1071_v48  ;;  %v1070_v60 = vadd.f32 %v1054_v56, %v1009_v54  ;;  %v3419_v61 = vpop.f32.mrf.mxu1  ;;  %v928_v30 = vpop.f32.mrf.mxu0  ;;  %v799_v48 = vld [vmem:[#allocation3 + $0x70] sm:$0xff] }
 0x13a   : > { %823 = vst.msk [vmem:[#allocation3 + $0x30] sm:$0xff] %vm284_vm1, %v807_v58  ;;  %v1046_v31 = vsel %vm1003_vm3, %v1011_v59, 0.0  ;;  %v810_v36 = vadd.f32 %v3419_v61, %v794_v62  ;;  %v1010_v38 = vrot.slane %v928_v30, 1 }
 0x13b   : > { %1086 = vst.msk [vmem:[#allocation3 + $0x10] sm:$0xff] %vm284_vm1, %v1070_v60  ;;  %v1057_v43 = vld [vmem:[#allocation3 + $0x28] sm:$0xff]  ;;  %v746_v44 = vpop.f32.mrf.mxu1  ;;  %v3456_v49 = vpop.f32.mrf.mxu0 }
 0x13c   : > { %v1073_v51 = vadd.f32 %v1057_v43, %v1046_v31  ;;  %826 = vst.msk [vmem:[#allocation3 + $0x48] sm:$0xff] %vm284_vm1, %v810_v36  ;;  %v809_v52 = vadd.f32 %v793_v47, %v746_v44  ;;  %v1014_v55 = vrot.slane %v3456_v49, 1  ;;  %v1012_v57 = vsel %vm1003_vm3, %v1010_v38, %v1011_v59 }
 0x13d   : > { %v1056_v63 = vld [vmem:[#allocation3 + $0x20] sm:$0xff]  ;;  %v3422_v0 = vpop.f32.mrf.mxu1  ;;  %v938_v2 = vpop.f32.mrf.mxu0 }
 0x13e   : > { %1089 = vst.msk [vmem:[#allocation3 + $0x28] sm:$0xff] %vm284_vm1, %v1073_v51  ;;  %v1072_v3 = vadd.f32 %v1056_v63, %v1012_v57  ;;  %825 = vst.msk [vmem:[#allocation3 + $0x40] sm:$0xff] %vm284_vm1, %v809_v52  ;;  %v1047_v4 = vsel %vm1003_vm3, %v1014_v55, 0.0  ;;  %v812_v5 = vadd.f32 %v3422_v0, %v796_v1  ;;  %v1013_v6 = vrot.slane %v938_v2, 1 }
 0x13f   : > { %v1059_v7 = vld [vmem:[#allocation3 + $0x38] sm:$0xff]  ;;  %v756_v8 = vpop.f32.mrf.mxu1  ;;  %v3459_v10 = vpop.f32.mrf.mxu0 }
 0x140   : > { %1088 = vst.msk [vmem:[#allocation3 + $0x20] sm:$0xff] %vm284_vm1, %v1072_v3  ;;  %v1075_v11 = vadd.f32 %v1059_v7, %v1047_v4  ;;  %828 = vst.msk [vmem:[#allocation3 + $0x58] sm:$0xff] %vm284_vm1, %v812_v5  ;;  %v811_v12 = vadd.f32 %v795_v9, %v756_v8  ;;  %v1017_v13 = vrot.slane %v3459_v10, 1  ;;  %v1015_v14 = vsel %vm1003_vm3, %v1013_v6, %v1014_v55  ;;  %v1382_v4 = vld [vmem:[#allocation3] sm:$0xff]  ;;  %v1383_v5 = vld [vmem:[#allocation3 + $0x8] sm:$0xff] }
 0x141   : > { %v1058_v15 = vld [vmem:[#allocation3 + $0x30] sm:$0xff]  ;;  %v3425_v16 = vpop.f32.mrf.mxu1  ;;  %v948_v18 = vpop.f32.mrf.mxu0 }
 0x142   : > { %1091 = vst.msk [vmem:[#allocation3 + $0x38] sm:$0xff] %vm284_vm1, %v1075_v11  ;;  %v1074_v19 = vadd.f32 %v1058_v15, %v1015_v14  ;;  %827 = vst.msk [vmem:[#allocation3 + $0x50] sm:$0xff] %vm284_vm1, %v811_v12  ;;  %v1048_v20 = vsel %vm1003_vm3, %v1017_v13, 0.0  ;;  %v814_v21 = vadd.f32 %v3425_v16, %v798_v17  ;;  %v1016_v22 = vrot.slane %v948_v18, 1 }
 0x143   : > { %v1061_v23 = vld [vmem:[#allocation3 + $0x48] sm:$0xff]  ;;  %v766_v24 = vpop.f32.mrf.mxu1  ;;  %v3462_v26 = vpop.f32.mrf.mxu0 }
 0x144   : > { %1090 = vst.msk [vmem:[#allocation3 + $0x30] sm:$0xff] %vm284_vm1, %v1074_v19  ;;  %v1077_v27 = vadd.f32 %v1061_v23, %v1048_v20  ;;  %830 = vst.msk [vmem:[#allocation3 + $0x68] sm:$0xff] %vm284_vm1, %v814_v21  ;;  %v813_v28 = vadd.f32 %v797_v25, %v766_v24  ;;  %v1020_v29 = vrot.slane %v3462_v26, 1  ;;  %v1018_v32 = vsel %vm1003_vm3, %v1016_v22, %v1017_v13  ;;  %v1384_v22 = vld [vmem:[#allocation3 + $0x10] sm:$0xff]  ;;  %v1385_v23 = vld [vmem:[#allocation3 + $0x18] sm:$0xff] }
 0x145   : > { %v1060_v33 = vld [vmem:[#allocation3 + $0x40] sm:$0xff]  ;;  %v3428_v34 = vpop.f32.mrf.mxu1  ;;  %v958_v37 = vpop.f32.mrf.mxu0 }
 0x146   : > { %1093 = vst.msk [vmem:[#allocation3 + $0x48] sm:$0xff] %vm284_vm1, %v1077_v27  ;;  %v1076_v39 = vadd.f32 %v1060_v33, %v1018_v32  ;;  %829 = vst.msk [vmem:[#allocation3 + $0x60] sm:$0xff] %vm284_vm1, %v813_v28  ;;  %v1049_v40 = vsel %vm1003_vm3, %v1020_v29, 0.0  ;;  %v816_v41 = vadd.f32 %v3428_v34, %v800_v35  ;;  %v1019_v42 = vrot.slane %v958_v37, 1 }
 0x147   : > { %v1063_v45 = vld [vmem:[#allocation3 + $0x58] sm:$0xff]  ;;  %v776_v46 = vpop.f32.mrf.mxu1  ;;  %v3465_v50 = vpop.f32.mrf.mxu0  ;;  %v1386_v37 = vld [vmem:[#allocation3 + $0x20] sm:$0xff] }
 0x148   : > { %1092 = vst.msk [vmem:[#allocation3 + $0x40] sm:$0xff] %vm284_vm1, %v1076_v39  ;;  %v1079_v53 = vadd.f32 %v1063_v45, %v1049_v40  ;;  %832 = vst.msk [vmem:[#allocation3 + $0x78] sm:$0xff] %vm284_vm1, %v816_v41  ;;  %v815_v54 = vadd.f32 %v799_v48, %v776_v46  ;;  %v1023_v56 = vrot.slane %v3465_v50, 1  ;;  %v1021_v58 = vsel %vm1003_vm3, %v1019_v42, %v1020_v29  ;;  %v1387_v39 = vld [vmem:[#allocation3 + $0x28] sm:$0xff] }
 0x149   : > { %v1062_v59 = vld [vmem:[#allocation3 + $0x50] sm:$0xff]  ;;  %v968_v60 = vpop.f32.mrf.mxu0  ;;  %v3487_v61 = vpop.f32.mrf.mxu1 }
 0x14a   : > { %1095 = vst.msk [vmem:[#allocation3 + $0x58] sm:$0xff] %vm284_vm1, %v1079_v53  ;;  %v1078_v62 = vadd.f32 %v1062_v59, %v1021_v58  ;;  %831 = vst.msk [vmem:[#allocation3 + $0x70] sm:$0xff] %vm284_vm1, %v815_v54  ;;  %v1050_v30 = vsel %vm1003_vm3, %v1023_v56, 0.0  ;;  %v1022_v31 = vrot.slane %v968_v60, 1  ;;  %v1335_v47 = vrot.slane %v3487_v61, 7 }
 0x14b   : > { %v1065_v36 = vld [vmem:[#allocation3 + $0x68] sm:$0xff]  ;;  %v3468_v38 = vpop.f32.mrf.mxu0  ;;  %v1239_v43 = vpop.f32.mrf.mxu1 }
 0x14c   : > { %1094 = vst.msk [vmem:[#allocation3 + $0x50] sm:$0xff] %vm284_vm1, %v1078_v62  ;;  %v1081_v44 = vadd.f32 %v1065_v36, %v1050_v30  ;;  %v1026_v49 = vrot.slane %v3468_v38, 1  ;;  %v1334_v51 = vrot.slane %v1239_v43, 7  ;;  %v1024_v52 = vsel %vm1003_vm3, %v1022_v31, %v1023_v56  ;;  %v1388_v62 = vld [vmem:[#allocation3 + $0x30] sm:$0xff]  ;;  %v1389_v30 = vld [vmem:[#allocation3 + $0x38] sm:$0xff] }
 0x14d   : > { %v1064_v55 = vld [vmem:[#allocation3 + $0x60] sm:$0xff]  ;;  %v978_v57 = vpop.f32.mrf.mxu0  ;;  %v3490_v63 = vpop.f32.mrf.mxu1 }
 0x14e   : > { %1097 = vst.msk [vmem:[#allocation3 + $0x68] sm:$0xff] %vm284_vm1, %v1081_v44  ;;  %v1080_v0 = vadd.f32 %v1064_v55, %v1024_v52  ;;  %v1051_v1 = vsel %vm1003_vm3, %v1026_v49, 0.0  ;;  %v1336_v2 = vsel %vm534_vm2, %v1334_v51, %v1335_v47  ;;  %v1374_v3 = vsel %vm534_vm2, 0.0, %v1334_v51 }
 0x14f   : > { %v1067_v6 = vld [vmem:[#allocation3 + $0x78] sm:$0xff]  ;;  %v1398_v7 = vadd.f32 %v1382_v4, %v1374_v3  ;;  %v1399_v8 = vadd.f32 %v1383_v5, %v1336_v2  ;;  %v1025_v9 = vrot.slane %v978_v57, 1  ;;  %v1249_v10 = vpop.f32.mrf.mxu1  ;;  %v3527_v11 = vpop.f32.mrf.mxu0  ;;  %v1338_v13 = vrot.slane %v3490_v63, 7  ;;  %v1390_v2 = vld [vmem:[#allocation3 + $0x40] sm:$0xff]  ;;  %v1391_v3 = vld [vmem:[#allocation3 + $0x48] sm:$0xff] }
 0x150   : > { %1096 = vst.msk [vmem:[#allocation3 + $0x60] sm:$0xff] %vm284_vm1, %v1080_v0  ;;  %v1083_v12 = vadd.f32 %v1067_v6, %v1051_v1  ;;  %v1337_v14 = vrot.slane %v1249_v10, 7 }
 0x151   : > { %1414 = vst.msk [vmem:[#allocation3] sm:$0xff] %vm284_vm1, %v1398_v7  ;;  %1415 = vst.msk [vmem:[#allocation3 + $0x8] sm:$0xff] %vm284_vm1, %v1399_v8  ;;  %v1027_v15 = vsel %vm1003_vm3, %v1025_v9, %v1026_v49  ;;  %v1066_v16 = vld [vmem:[#allocation3 + $0x70] sm:$0xff]  ;;  %v3493_v17 = vpop.f32.mrf.mxu1  ;;  %v1505_v18 = vpop.f32.mrf.mxu0 }
 0x152   : > { %1099 = vst.msk [vmem:[#allocation3 + $0x78] sm:$0xff] %vm284_vm1, %v1083_v12  ;;  %v1082_v19 = vadd.f32 %v1066_v16, %v1027_v15  ;;  %v1339_v20 = vsel %vm534_vm2, %v1337_v14, %v1338_v13  ;;  %v1375_v21 = vsel %vm534_vm2, 0.0, %v1337_v14  ;;  %v1341_v28 = vrot.slane %v3493_v17, 7 }
 0x153   : > { %v1400_v24 = vadd.f32 %v1384_v22, %v1375_v21  ;;  %v1401_v25 = vadd.f32 %v1385_v23, %v1339_v20  ;;  %v1259_v26 = vpop.f32.mrf.mxu1  ;;  %v3530_v27 = vpop.f32.mrf.mxu0 }
 0x154   : > { %1098 = vst.msk [vmem:[#allocation3 + $0x70] sm:$0xff] %vm284_vm1, %v1082_v19  ;;  %v1340_v29 = vrot.slane %v1259_v26, 7  ;;  %v1393_v19 = vld [vmem:[#allocation3 + $0x58] sm:$0xff] }
 0x155   : > { %1416 = vst.msk [vmem:[#allocation3 + $0x10] sm:$0xff] %vm284_vm1, %v1400_v24  ;;  %1417 = vst.msk [vmem:[#allocation3 + $0x18] sm:$0xff] %vm284_vm1, %v1401_v25  ;;  %v3496_v32 = vpop.f32.mrf.mxu1  ;;  %v1515_v33 = vpop.f32.mrf.mxu0 }
 0x156   : > { %v1342_v34 = vsel %vm534_vm2, %v1340_v29, %v1341_v28  ;;  %v1376_v35 = vsel %vm534_vm2, 0.0, %v1340_v29  ;;  %v1344_v50 = vrot.slane %v3496_v32, 7 }
 0x157   : > { %v1402_v40 = vadd.f32 %v1386_v37, %v1376_v35  ;;  %v1403_v41 = vadd.f32 %v1387_v39, %v1342_v34  ;;  %v1269_v42 = vpop.f32.mrf.mxu1  ;;  %v3533_v45 = vpop.f32.mrf.mxu0  ;;  %v1394_v37 = vld [vmem:[#allocation3 + $0x60] sm:$0xff]  ;;  %v1395_v39 = vld [vmem:[#allocation3 + $0x68] sm:$0xff] }
 0x158   : > { %v1585_v46 = vld [vmem:[#allocation3 + $0x8] sm:$0xff]  ;;  %v1584_v48 = vld [vmem:[#allocation3] sm:$0xff]  ;;  %v1343_v53 = vrot.slane %v1269_v42, 7 }
 0x159   : > { %v1601_v54 = vadd.f32 %v3527_v11, %v1585_v46  ;;  %v1600_v56 = vadd.f32 %v1584_v48, %v1505_v18  ;;  %1418 = vst.msk [vmem:[#allocation3 + $0x20] sm:$0xff] %vm284_vm1, %v1402_v40  ;;  %1419 = vst.msk [vmem:[#allocation3 + $0x28] sm:$0xff] %vm284_vm1, %v1403_v41  ;;  %v3499_v58 = vpop.f32.mrf.mxu1  ;;  %v1525_v59 = vpop.f32.mrf.mxu0  ;;  %v1392_v18 = vld [vmem:[#allocation3 + $0x50] sm:$0xff] }
 0x15a   : > { %v1345_v60 = vsel %vm534_vm2, %v1343_v53, %v1344_v50  ;;  %v1377_v61 = vsel %vm534_vm2, 0.0, %v1343_v53  ;;  %v1347_v49 = vrot.slane %v3499_v58, 7 }
 0x15b   : > { %1617 = vst.msk [vmem:[#allocation3 + $0x8] sm:$0xff] %vm284_vm1, %v1601_v54  ;;  %1616 = vst.msk [vmem:[#allocation3] sm:$0xff] %vm284_vm1, %v1600_v56  ;;  %v1404_v31 = vadd.f32 %v1388_v62, %v1377_v61  ;;  %v1405_v36 = vadd.f32 %v1389_v30, %v1345_v60  ;;  %v1279_v38 = vpop.f32.mrf.mxu1  ;;  %v3536_v43 = vpop.f32.mrf.mxu0  ;;  %v1396_v62 = vld [vmem:[#allocation3 + $0x70] sm:$0xff]  ;;  %v1397_v30 = vld [vmem:[#allocation3 + $0x78] sm:$0xff] }
 0x15c   : > { %v1587_v44 = vld [vmem:[#allocation3 + $0x18] sm:$0xff]  ;;  %v1586_v47 = vld [vmem:[#allocation3 + $0x10] sm:$0xff]  ;;  %v1346_v51 = vrot.slane %v1279_v38, 7 }
 0x15d   : > { %v1603_v52 = vadd.f32 %v3530_v27, %v1587_v44  ;;  %v1602_v55 = vadd.f32 %v1586_v47, %v1515_v33  ;;  %1420 = vst.msk [vmem:[#allocation3 + $0x30] sm:$0xff] %vm284_vm1, %v1404_v31  ;;  %1421 = vst.msk [vmem:[#allocation3 + $0x38] sm:$0xff] %vm284_vm1, %v1405_v36  ;;  %v3502_v57 = vpop.f32.mrf.mxu1  ;;  %v1535_v63 = vpop.f32.mrf.mxu0 }
 0x15e   : > { %v1348_v0 = vsel %vm534_vm2, %v1346_v51, %v1347_v49  ;;  %v1378_v1 = vsel %vm534_vm2, 0.0, %v1346_v51  ;;  %v1350_v10 = vrot.slane %v3502_v57, 7 }
 0x15f   : > { %1619 = vst.msk [vmem:[#allocation3 + $0x18] sm:$0xff] %vm284_vm1, %v1603_v52  ;;  %1618 = vst.msk [vmem:[#allocation3 + $0x10] sm:$0xff] %vm284_vm1, %v1602_v55  ;;  %v1406_v4 = vadd.f32 %v1390_v2, %v1378_v1  ;;  %v1407_v5 = vadd.f32 %v1391_v3, %v1348_v0  ;;  %v1289_v6 = vpop.f32.mrf.mxu1  ;;  %v3539_v7 = vpop.f32.mrf.mxu0 }
 0x160   : > { %v1589_v8 = vld [vmem:[#allocation3 + $0x28] sm:$0xff]  ;;  %v1588_v9 = vld [vmem:[#allocation3 + $0x20] sm:$0xff]  ;;  %v1349_v11 = vrot.slane %v1289_v6, 7 }
 0x161   : > { %v1605_v12 = vadd.f32 %v3533_v45, %v1589_v8  ;;  %v1604_v13 = vadd.f32 %v1588_v9, %v1525_v59  ;;  %1422 = vst.msk [vmem:[#allocation3 + $0x40] sm:$0xff] %vm284_vm1, %v1406_v4  ;;  %1423 = vst.msk [vmem:[#allocation3 + $0x48] sm:$0xff] %vm284_vm1, %v1407_v5  ;;  %v3505_v14 = vpop.f32.mrf.mxu1  ;;  %v1545_v15 = vpop.f32.mrf.mxu0 }
 0x162   : > { %v1351_v16 = vsel %vm534_vm2, %v1349_v11, %v1350_v10  ;;  %v1379_v17 = vsel %vm534_vm2, 0.0, %v1349_v11  ;;  %v1353_v26 = vrot.slane %v3505_v14, 7  ;;  %v1851_v52 = vld [vmem:[#allocation3 + $0x8] sm:$0xff]  ;;  %v1850_v4 = vld [vmem:[#allocation3] sm:$0xff] }
 0x163   : > { %1621 = vst.msk [vmem:[#allocation3 + $0x28] sm:$0xff] %vm284_vm1, %v1605_v12  ;;  %1620 = vst.msk [vmem:[#allocation3 + $0x20] sm:$0xff] %vm284_vm1, %v1604_v13  ;;  %v1408_v20 = vadd.f32 %v1392_v18, %v1379_v17  ;;  %v1409_v21 = vadd.f32 %v1393_v19, %v1351_v16  ;;  %v1299_v22 = vpop.f32.mrf.mxu1  ;;  %v3542_v23 = vpop.f32.mrf.mxu0 }
 0x164   : > { %v1591_v24 = vld [vmem:[#allocation3 + $0x38] sm:$0xff]  ;;  %v1590_v25 = vld [vmem:[#allocation3 + $0x30] sm:$0xff]  ;;  %v1352_v27 = vrot.slane %v1299_v22, 7 }
 0x165   : > { %v1607_v28 = vadd.f32 %v3536_v43, %v1591_v24  ;;  %v1606_v29 = vadd.f32 %v1590_v25, %v1535_v63  ;;  %1424 = vst.msk [vmem:[#allocation3 + $0x50] sm:$0xff] %vm284_vm1, %v1408_v20  ;;  %1425 = vst.msk [vmem:[#allocation3 + $0x58] sm:$0xff] %vm284_vm1, %v1409_v21  ;;  %v3508_v32 = vpop.f32.mrf.mxu1  ;;  %v1555_v33 = vpop.f32.mrf.mxu0 }
 0x166   : > { %v1354_v34 = vsel %vm534_vm2, %v1352_v27, %v1353_v26  ;;  %v1380_v35 = vsel %vm534_vm2, 0.0, %v1352_v27  ;;  %v1356_v50 = vrot.slane %v3508_v32, 7  ;;  %v1853_v12 = vld [vmem:[#allocation3 + $0x18] sm:$0xff]  ;;  %v1852_v20 = vld [vmem:[#allocation3 + $0x10] sm:$0xff] }
 0x167   : > { %1623 = vst.msk [vmem:[#allocation3 + $0x38] sm:$0xff] %vm284_vm1, %v1607_v28  ;;  %1622 = vst.msk [vmem:[#allocation3 + $0x30] sm:$0xff] %vm284_vm1, %v1606_v29  ;;  %v1410_v40 = vadd.f32 %v1394_v37, %v1380_v35  ;;  %v1411_v41 = vadd.f32 %v1395_v39, %v1354_v34  ;;  %v1309_v42 = vpop.f32.mrf.mxu1  ;;  %v3545_v45 = vpop.f32.mrf.mxu0 }
 0x168   : > { %v1593_v46 = vld [vmem:[#allocation3 + $0x48] sm:$0xff]  ;;  %v1592_v48 = vld [vmem:[#allocation3 + $0x40] sm:$0xff]  ;;  %v1355_v53 = vrot.slane %v1309_v42, 7 }
 0x169   : > { %v1609_v54 = vadd.f32 %v3539_v7, %v1593_v46  ;;  %v1608_v56 = vadd.f32 %v1592_v48, %v1545_v15  ;;  %1426 = vst.msk [vmem:[#allocation3 + $0x60] sm:$0xff] %vm284_vm1, %v1410_v40  ;;  %1427 = vst.msk [vmem:[#allocation3 + $0x68] sm:$0xff] %vm284_vm1, %v1411_v41  ;;  %v1565_v58 = vpop.f32.mrf.mxu0  ;;  %v3567_v59 = vpop.f32.mrf.mxu1 }
 0x16a   : > { %v1357_v60 = vsel %vm534_vm2, %v1355_v53, %v1356_v50  ;;  %v1381_v61 = vsel %vm534_vm2, 0.0, %v1355_v53  ;;  %v1803_v31 = vrot.slane %v3567_v59, 1  ;;  %v1855_v32 = vld [vmem:[#allocation3 + $0x28] sm:$0xff]  ;;  %v1854_v48 = vld [vmem:[#allocation3 + $0x20] sm:$0xff] }
 0x16b   : > { %1625 = vst.msk [vmem:[#allocation3 + $0x48] sm:$0xff] %vm284_vm1, %v1609_v54  ;;  %1624 = vst.msk [vmem:[#allocation3 + $0x40] sm:$0xff] %vm284_vm1, %v1608_v56  ;;  %v1412_v36 = vadd.f32 %v1396_v62, %v1381_v61  ;;  %v1413_v38 = vadd.f32 %v1397_v30, %v1357_v60  ;;  %v3548_v43 = vpop.f32.mrf.mxu0  ;;  %v1707_v44 = vpop.f32.mrf.mxu1 }
 0x16c   : > { %v1595_v47 = vld [vmem:[#allocation3 + $0x58] sm:$0xff]  ;;  %v1594_v49 = vld [vmem:[#allocation3 + $0x50] sm:$0xff]  ;;  %v1842_v51 = vsel %vm1003_vm3, %v1803_v31, 0.0  ;;  %v1802_v55 = vrot.slane %v1707_v44, 1 }
 0x16d   : > { %v1611_v57 = vadd.f32 %v3542_v23, %v1595_v47  ;;  %v1610_v63 = vadd.f32 %v1594_v49, %v1555_v33  ;;  %1428 = vst.msk [vmem:[#allocation3 + $0x70] sm:$0xff] %vm284_vm1, %v1412_v36  ;;  %1429 = vst.msk [vmem:[#allocation3 + $0x78] sm:$0xff] %vm284_vm1, %v1413_v38  ;;  %v1867_v0 = vadd.f32 %v1851_v52, %v1842_v51  ;;  %v1575_v1 = vpop.f32.mrf.mxu0  ;;  %v3570_v2 = vpop.f32.mrf.mxu1 }
 0x16e   : > { %v1804_v3 = vsel %vm1003_vm3, %v1802_v55, %v1803_v31  ;;  %v1806_v5 = vrot.slane %v3570_v2, 1  ;;  %v1857_v30 = vld [vmem:[#allocation3 + $0x38] sm:$0xff]  ;;  %v1856_v52 = vld [vmem:[#allocation3 + $0x30] sm:$0xff] }
 0x16f   : > { %1627 = vst.msk [vmem:[#allocation3 + $0x58] sm:$0xff] %vm284_vm1, %v1611_v57  ;;  %1626 = vst.msk [vmem:[#allocation3 + $0x50] sm:$0xff] %vm284_vm1, %v1610_v63  ;;  %v1866_v6 = vadd.f32 %v1850_v4, %v1804_v3  ;;  %v1717_v7 = vpop.f32.mrf.mxu1  ;;  %v3607_v8 = vpop.f32.mrf.mxu0 }
 0x170   : > { %1883 = vst.msk [vmem:[#allocation3 + $0x8] sm:$0xff] %vm284_vm1, %v1867_v0  ;;  %v1597_v9 = vld [vmem:[#allocation3 + $0x68] sm:$0xff]  ;;  %v1596_v10 = vld [vmem:[#allocation3 + $0x60] sm:$0xff]  ;;  %v1843_v11 = vsel %vm1003_vm3, %v1806_v5, 0.0  ;;  %v1805_v13 = vrot.slane %v1717_v7, 1  ;;  %v2134_v21 = vrot.slane %v3607_v8, 7 }
 0x171   : > { %v1613_v14 = vadd.f32 %v3545_v45, %v1597_v9  ;;  %v1612_v15 = vadd.f32 %v1596_v10, %v1565_v58  ;;  %1882 = vst.msk [vmem:[#allocation3] sm:$0xff] %vm284_vm1, %v1866_v6  ;;  %v1869_v16 = vadd.f32 %v1853_v12, %v1843_v11  ;;  %v3573_v17 = vpop.f32.mrf.mxu1  ;;  %v2038_v18 = vpop.f32.mrf.mxu0 }
 0x172   : > { %v1807_v19 = vsel %vm1003_vm3, %v1805_v13, %v1806_v5  ;;  %v1809_v22 = vrot.slane %v3573_v17, 1  ;;  %v2133_v23 = vrot.slane %v2038_v18, 7  ;;  %v1859_v7 = vld [vmem:[#allocation3 + $0x48] sm:$0xff]  ;;  %v1858_v17 = vld [vmem:[#allocation3 + $0x40] sm:$0xff] }
 0x173   : > { %1629 = vst.msk [vmem:[#allocation3 + $0x68] sm:$0xff] %vm284_vm1, %v1613_v14  ;;  %1628 = vst.msk [vmem:[#allocation3 + $0x60] sm:$0xff] %vm284_vm1, %v1612_v15  ;;  %v1868_v24 = vadd.f32 %v1852_v20, %v1807_v19  ;;  %v1727_v25 = vpop.f32.mrf.mxu1  ;;  %v3610_v26 = vpop.f32.mrf.mxu0 }
 0x174   : > { %1885 = vst.msk [vmem:[#allocation3 + $0x18] sm:$0xff] %vm284_vm1, %v1869_v16  ;;  %v1599_v27 = vld [vmem:[#allocation3 + $0x78] sm:$0xff]  ;;  %v1598_v28 = vld [vmem:[#allocation3 + $0x70] sm:$0xff]  ;;  %v1844_v29 = vsel %vm1003_vm3, %v1809_v22, 0.0  ;;  %v1808_v33 = vrot.slane %v1727_v25, 1  ;;  %v2137_v39 = vrot.slane %v3610_v26, 7  ;;  %v2135_v42 = vsel %vm534_vm2, %v2133_v23, %v2134_v21 }
 0x175   : > { %v1615_v34 = vadd.f32 %v3548_v43, %v1599_v27  ;;  %v1614_v35 = vadd.f32 %v1598_v28, %v1575_v1  ;;  %1884 = vst.msk [vmem:[#allocation3 + $0x10] sm:$0xff] %vm284_vm1, %v1868_v24  ;;  %v1871_v37 = vadd.f32 %v1855_v32, %v1844_v29  ;;  %v3576_v40 = vpop.f32.mrf.mxu1  ;;  %v2048_v41 = vpop.f32.mrf.mxu0  ;;  %v2173_v60 = vsel %vm534_vm2, 0.0, %v2133_v23 }
 0x176   : > { %v1810_v46 = vsel %vm1003_vm3, %v1808_v33, %v1809_v22  ;;  %v1812_v50 = vrot.slane %v3576_v40, 1  ;;  %v2136_v53 = vrot.slane %v2048_v41, 7  ;;  %v1861_v27 = vld [vmem:[#allocation3 + $0x58] sm:$0xff]  ;;  %v1860_v40 = vld [vmem:[#allocation3 + $0x50] sm:$0xff] }
 0x177   : > { %v2182_v45 = vld [vmem:[#allocation3 + $0x8] sm:$0xff]  ;;  %1631 = vst.msk [vmem:[#allocation3 + $0x78] sm:$0xff] %vm284_vm1, %v1615_v34  ;;  %1630 = vst.msk [vmem:[#allocation3 + $0x70] sm:$0xff] %vm284_vm1, %v1614_v35  ;;  %v1870_v56 = vadd.f32 %v1854_v48, %v1810_v46  ;;  %v1737_v58 = vpop.f32.mrf.mxu1  ;;  %v3613_v59 = vpop.f32.mrf.mxu0 }
 0x178   : > { %1887 = vst.msk [vmem:[#allocation3 + $0x28] sm:$0xff] %vm284_vm1, %v1871_v37  ;;  %v2198_v54 = vadd.f32 %v2182_v45, %v2135_v42  ;;  %v2181_v61 = vld [vmem:[#allocation3] sm:$0xff]  ;;  %v1845_v62 = vsel %vm1003_vm3, %v1812_v50, 0.0  ;;  %v1811_v31 = vrot.slane %v1737_v58, 1  ;;  %v2138_v43 = vsel %vm534_vm2, %v2136_v53, %v2137_v39 }
 0x179   : > { %v2197_v36 = vadd.f32 %v2181_v61, %v2173_v60  ;;  %1886 = vst.msk [vmem:[#allocation3 + $0x20] sm:$0xff] %vm284_vm1, %v1870_v56  ;;  %v1873_v38 = vadd.f32 %v1857_v30, %v1845_v62  ;;  %v3579_v44 = vpop.f32.mrf.mxu1  ;;  %v2058_v47 = vpop.f32.mrf.mxu0  ;;  %v2140_v55 = vrot.slane %v3613_v59, 7  ;;  %v2174_v4 = vsel %vm534_vm2, 0.0, %v2136_v53 }
 0x17a   : > { %2214 = vst.msk [vmem:[#allocation3 + $0x8] sm:$0xff] %vm284_vm1, %v2198_v54  ;;  %v1813_v51 = vsel %vm1003_vm3, %v1811_v31, %v1812_v50  ;;  %v1815_v57 = vrot.slane %v3579_v44, 1  ;;  %v2139_v63 = vrot.slane %v2058_v47, 7  ;;  %v1863_v59 = vld [vmem:[#allocation3 + $0x68] sm:$0xff]  ;;  %v1862_v47 = vld [vmem:[#allocation3 + $0x60] sm:$0xff] }
 0x17b   : > { %v2184_v49 = vld [vmem:[#allocation3 + $0x18] sm:$0xff]  ;;  %2213 = vst.msk [vmem:[#allocation3] sm:$0xff] %vm284_vm1, %v2197_v36  ;;  %1889 = vst.msk [vmem:[#allocation3 + $0x38] sm:$0xff] %vm284_vm1, %v1873_v38  ;;  %v1872_v1 = vadd.f32 %v1856_v52, %v1813_v51  ;;  %v1747_v2 = vpop.f32.mrf.mxu1  ;;  %v3616_v3 = vpop.f32.mrf.mxu0 }
 0x17c   : > { %v2200_v0 = vadd.f32 %v2184_v49, %v2138_v43  ;;  %v2183_v5 = vld [vmem:[#allocation3 + $0x10] sm:$0xff]  ;;  %v1846_v6 = vsel %vm1003_vm3, %v1815_v57, 0.0  ;;  %v1814_v8 = vrot.slane %v1747_v2, 1  ;;  %v2143_v11 = vrot.slane %v3616_v3, 7 }
 0x17d   : > { %v2199_v9 = vadd.f32 %v2183_v5, %v2174_v4  ;;  %1888 = vst.msk [vmem:[#allocation3 + $0x30] sm:$0xff] %vm284_vm1, %v1872_v1  ;;  %v1875_v10 = vadd.f32 %v1859_v7, %v1846_v6  ;;  %v3582_v12 = vpop.f32.mrf.mxu1  ;;  %v2068_v13 = vpop.f32.mrf.mxu0  ;;  %v2141_v14 = vsel %vm534_vm2, %v2139_v63, %v2140_v55  ;;  %v2175_v24 = vsel %vm534_vm2, 0.0, %v2139_v63 }
 0x17e   : > { %2216 = vst.msk [vmem:[#allocation3 + $0x18] sm:$0xff] %vm284_vm1, %v2200_v0  ;;  %v1816_v16 = vsel %vm1003_vm3, %v1814_v8, %v1815_v57  ;;  %v1818_v18 = vrot.slane %v3582_v12, 1  ;;  %v2142_v19 = vrot.slane %v2068_v13, 7  ;;  %v1865_v3 = vld [vmem:[#allocation3 + $0x78] sm:$0xff]  ;;  %v1864_v13 = vld [vmem:[#allocation3 + $0x70] sm:$0xff] }
 0x17f   : > { %v2186_v15 = vld [vmem:[#allocation3 + $0x28] sm:$0xff]  ;;  %2215 = vst.msk [vmem:[#allocation3 + $0x10] sm:$0xff] %vm284_vm1, %v2199_v9  ;;  %1891 = vst.msk [vmem:[#allocation3 + $0x48] sm:$0xff] %vm284_vm1, %v1875_v10  ;;  %v1874_v21 = vadd.f32 %v1858_v17, %v1816_v16  ;;  %v1757_v22 = vpop.f32.mrf.mxu1  ;;  %v3619_v23 = vpop.f32.mrf.mxu0 }
 0x180   : > { %v2202_v20 = vadd.f32 %v2186_v15, %v2141_v14  ;;  %v2185_v25 = vld [vmem:[#allocation3 + $0x20] sm:$0xff]  ;;  %v1847_v26 = vsel %vm1003_vm3, %v1818_v18, 0.0  ;;  %v1817_v28 = vrot.slane %v1757_v22, 1  ;;  %v2144_v33 = vsel %vm534_vm2, %v2142_v19, %v2143_v11 }
 0x181   : > { %v2201_v29 = vadd.f32 %v2185_v25, %v2175_v24  ;;  %1890 = vst.msk [vmem:[#allocation3 + $0x40] sm:$0xff] %vm284_vm1, %v1874_v21  ;;  %v1877_v32 = vadd.f32 %v1861_v27, %v1847_v26  ;;  %v3585_v34 = vpop.f32.mrf.mxu1  ;;  %v2078_v35 = vpop.f32.mrf.mxu0  ;;  %v2146_v41 = vrot.slane %v3619_v23, 7  ;;  %v2176_v54 = vsel %vm534_vm2, 0.0, %v2142_v19  ;;  %v2384_v10 = vld [vmem:[#allocation3 + $0x8] sm:$0xff] }
 0x182   : > { %2218 = vst.msk [vmem:[#allocation3 + $0x28] sm:$0xff] %vm284_vm1, %v2202_v20  ;;  %v2188_v37 = vld [vmem:[#allocation3 + $0x38] sm:$0xff]  ;;  %v1819_v39 = vsel %vm1003_vm3, %v1817_v28, %v1818_v18  ;;  %v1821_v42 = vrot.slane %v3585_v34, 1  ;;  %v2145_v45 = vrot.slane %v2078_v35, 7  ;;  %v2383_v21 = vld [vmem:[#allocation3] sm:$0xff] }
 0x183   : > { %2217 = vst.msk [vmem:[#allocation3 + $0x20] sm:$0xff] %vm284_vm1, %v2201_v29  ;;  %1893 = vst.msk [vmem:[#allocation3 + $0x58] sm:$0xff] %vm284_vm1, %v1877_v32  ;;  %v2204_v46 = vadd.f32 %v2188_v37, %v2144_v33  ;;  %v1876_v48 = vadd.f32 %v1860_v40, %v1819_v39  ;;  %v1767_v50 = vpop.f32.mrf.mxu1  ;;  %v3622_v53 = vpop.f32.mrf.mxu0 }
 0x184   : > { %v2187_v56 = vld [vmem:[#allocation3 + $0x30] sm:$0xff]  ;;  %v1848_v58 = vsel %vm1003_vm3, %v1821_v42, 0.0  ;;  %v1820_v60 = vrot.slane %v1767_v50, 1  ;;  %v2149_v30 = vrot.slane %v3622_v53, 7  ;;  %v2147_v38 = vsel %vm534_vm2, %v2145_v45, %v2146_v41 }
 0x185   : > { %v2203_v61 = vadd.f32 %v2187_v56, %v2176_v54  ;;  %2220 = vst.msk [vmem:[#allocation3 + $0x38] sm:$0xff] %vm284_vm1, %v2204_v46  ;;  %1892 = vst.msk [vmem:[#allocation3 + $0x50] sm:$0xff] %vm284_vm1, %v1876_v48  ;;  %v1879_v62 = vadd.f32 %v1863_v59, %v1848_v58  ;;  %v3588_v31 = vpop.f32.mrf.mxu1  ;;  %v2088_v36 = vpop.f32.mrf.mxu0  ;;  %v2177_v0 = vsel %vm534_vm2, 0.0, %v2145_v45  ;;  %v2386_v28 = vld [vmem:[#allocation3 + $0x18] sm:$0xff] }
 0x186   : > { %v2190_v43 = vld [vmem:[#allocation3 + $0x48] sm:$0xff]  ;;  %v1822_v44 = vsel %vm1003_vm3, %v1820_v60, %v1821_v42  ;;  %v1824_v49 = vrot.slane %v3588_v31, 1  ;;  %v2148_v51 = vrot.slane %v2088_v36, 7  ;;  %v2385_v40 = vld [vmem:[#allocation3 + $0x10] sm:$0xff] }
 0x187   : > { %2219 = vst.msk [vmem:[#allocation3 + $0x30] sm:$0xff] %vm284_vm1, %v2203_v61  ;;  %1895 = vst.msk [vmem:[#allocation3 + $0x68] sm:$0xff] %vm284_vm1, %v1879_v62  ;;  %v2206_v52 = vadd.f32 %v2190_v43, %v2147_v38  ;;  %v1878_v55 = vadd.f32 %v1862_v47, %v1822_v44  ;;  %v1777_v57 = vpop.f32.mrf.mxu1  ;;  %v3625_v63 = vpop.f32.mrf.mxu0 }
 0x188   : > { %v2189_v1 = vld [vmem:[#allocation3 + $0x40] sm:$0xff]  ;;  %v1849_v2 = vsel %vm1003_vm3, %v1824_v49, 0.0  ;;  %v1823_v4 = vrot.slane %v1777_v57, 1  ;;  %v2150_v7 = vsel %vm534_vm2, %v2148_v51, %v2149_v30  ;;  %v2152_v14 = vrot.slane %v3625_v63, 7 }
 0x189   : > { %v2205_v5 = vadd.f32 %v2189_v1, %v2177_v0  ;;  %2222 = vst.msk [vmem:[#allocation3 + $0x48] sm:$0xff] %vm284_vm1, %v2206_v52  ;;  %1894 = vst.msk [vmem:[#allocation3 + $0x60] sm:$0xff] %vm284_vm1, %v1878_v55  ;;  %v1881_v6 = vadd.f32 %v1865_v3, %v1849_v2  ;;  %v2098_v8 = vpop.f32.mrf.mxu0  ;;  %v3647_v9 = vpop.f32.mrf.mxu1  ;;  %v2178_v22 = vsel %vm534_vm2, 0.0, %v2148_v51  ;;  %v2388_v54 = vld [vmem:[#allocation3 + $0x28] sm:$0xff] }
 0x18a   : > { %v2192_v11 = vld [vmem:[#allocation3 + $0x58] sm:$0xff]  ;;  %v1825_v12 = vsel %vm1003_vm3, %v1823_v4, %v1824_v49  ;;  %v2151_v15 = vrot.slane %v2098_v8, 7  ;;  %v2400_v16 = vadd.f32 %v3647_v9, %v2384_v10  ;;  %v2387_v38 = vld [vmem:[#allocation3 + $0x20] sm:$0xff] }
 0x18b   : > { %2221 = vst.msk [vmem:[#allocation3 + $0x40] sm:$0xff] %vm284_vm1, %v2205_v5  ;;  %1897 = vst.msk [vmem:[#allocation3 + $0x78] sm:$0xff] %vm284_vm1, %v1881_v6  ;;  %v2208_v17 = vadd.f32 %v2192_v11, %v2150_v7  ;;  %v1880_v18 = vadd.f32 %v1864_v13, %v1825_v12  ;;  %v3628_v19 = vpop.f32.mrf.mxu0  ;;  %v2304_v20 = vpop.f32.mrf.mxu1 }
 0x18c   : > { %v2191_v23 = vld [vmem:[#allocation3 + $0x50] sm:$0xff]  ;;  %2416 = vst.msk [vmem:[#allocation3 + $0x8] sm:$0xff] %vm284_vm1, %v2400_v16  ;;  %v2399_v24 = vadd.f32 %v2383_v21, %v2304_v20  ;;  %v2153_v29 = vsel %vm534_vm2, %v2151_v15, %v2152_v14  ;;  %v2155_v33 = vrot.slane %v3628_v19, 7  ;;  %v2179_v42 = vsel %vm534_vm2, 0.0, %v2151_v15  ;;  %v2390_v1 = vld [vmem:[#allocation3 + $0x38] sm:$0xff] }
 0x18d   : > { %v2207_v25 = vadd.f32 %v2191_v23, %v2178_v22  ;;  %2224 = vst.msk [vmem:[#allocation3 + $0x58] sm:$0xff] %vm284_vm1, %v2208_v17  ;;  %1896 = vst.msk [vmem:[#allocation3 + $0x70] sm:$0xff] %vm284_vm1, %v1880_v18  ;;  %v2108_v26 = vpop.f32.mrf.mxu0  ;;  %v3650_v27 = vpop.f32.mrf.mxu1  ;;  %v4827_v23 = vld [vmem:[%s4995_s2] ss:$0 sm:$0xff] }
 0x18e   : > { %v2194_v32 = vld [vmem:[#allocation3 + $0x68] sm:$0xff]  ;;  %2415 = vst.msk [vmem:[#allocation3] sm:$0xff] %vm284_vm1, %v2399_v24  ;;  %v2154_v34 = vrot.slane %v2108_v26, 7  ;;  %v2402_v35 = vadd.f32 %v3650_v27, %v2386_v28  ;;  %v2389_v9 = vld [vmem:[#allocation3 + $0x30] sm:$0xff]  ;;  %v4832_v28 = vld [vmem:[%s4996_s3] ss:$0 sm:$0xff] }
 0x18f   : > { %2223 = vst.msk [vmem:[#allocation3 + $0x50] sm:$0xff] %vm284_vm1, %v2207_v25  ;;  %v2210_v37 = vadd.f32 %v2194_v32, %v2153_v29  ;;  %v2314_v39 = vpop.f32.mrf.mxu1  ;;  %v3687_v41 = vpop.f32.mrf.mxu0 }
 0x190   : > { %v2193_v45 = vld [vmem:[#allocation3 + $0x60] sm:$0xff]  ;;  %2418 = vst.msk [vmem:[#allocation3 + $0x18] sm:$0xff] %vm284_vm1, %v2402_v35  ;;  %v2401_v46 = vadd.f32 %v2385_v40, %v2314_v39  ;;  %v2602_v48 = vrot.slane %v3687_v41, 1  ;;  %v2156_v58 = vsel %vm534_vm2, %v2154_v34, %v2155_v33  ;;  %v2180_v44 = vsel %vm534_vm2, 0.0, %v2154_v34  ;;  %v2392_v17 = vld [vmem:[#allocation3 + $0x48] sm:$0xff] }
 0x191   : > { %v2209_v50 = vadd.f32 %v2193_v45, %v2179_v42  ;;  %2226 = vst.msk [vmem:[#allocation3 + $0x68] sm:$0xff] %vm284_vm1, %v2210_v37  ;;  %v3653_v53 = vpop.f32.mrf.mxu1  ;;  %v2506_v56 = vpop.f32.mrf.mxu0 }
 0x192   : > { %v2196_v59 = vld [vmem:[#allocation3 + $0x78] sm:$0xff]  ;;  %2417 = vst.msk [vmem:[#allocation3 + $0x10] sm:$0xff] %vm284_vm1, %v2401_v46  ;;  %v2641_v60 = vsel %vm1003_vm3, %v2602_v48, 0.0  ;;  %v2404_v61 = vadd.f32 %v3653_v53, %v2388_v54  ;;  %v2601_v62 = vrot.slane %v2506_v56, 1  ;;  %v2391_v26 = vld [vmem:[#allocation3 + $0x40] sm:$0xff] }
 0x193   : > { %2225 = vst.msk [vmem:[#allocation3 + $0x60] sm:$0xff] %vm284_vm1, %v2209_v50  ;;  %v2212_v30 = vadd.f32 %v2196_v59, %v2156_v58  ;;  %v2650_v31 = vld [vmem:[#allocation3 + $0x8] sm:$0xff]  ;;  %v2324_v36 = vpop.f32.mrf.mxu1  ;;  %v3690_v43 = vpop.f32.mrf.mxu0 }
 0x194   : > { %v2195_v47 = vld [vmem:[#allocation3 + $0x70] sm:$0xff]  ;;  %v2666_v49 = vadd.f32 %v2650_v31, %v2641_v60  ;;  %2420 = vst.msk [vmem:[#allocation3 + $0x28] sm:$0xff] %vm284_vm1, %v2404_v61  ;;  %v2403_v51 = vadd.f32 %v2387_v38, %v2324_v36  ;;  %v2605_v52 = vrot.slane %v3690_v43, 1  ;;  %v2603_v57 = vsel %vm1003_vm3, %v2601_v62, %v2602_v48  ;;  %v2394_v40 = vld [vmem:[#allocation3 + $0x58] sm:$0xff] }
 0x195   : > { %v2211_v55 = vadd.f32 %v2195_v47, %v2180_v44  ;;  %2228 = vst.msk [vmem:[#allocation3 + $0x78] sm:$0xff] %vm284_vm1, %v2212_v30  ;;  %v2649_v63 = vld [vmem:[#allocation3] sm:$0xff]  ;;  %v3656_v0 = vpop.f32.mrf.mxu1  ;;  %v2516_v2 = vpop.f32.mrf.mxu0 }
 0x196   : > { %2682 = vst.msk [vmem:[#allocation3 + $0x8] sm:$0xff] %vm284_vm1, %v2666_v49  ;;  %v2665_v3 = vadd.f32 %v2649_v63, %v2603_v57  ;;  %2419 = vst.msk [vmem:[#allocation3 + $0x20] sm:$0xff] %vm284_vm1, %v2403_v51  ;;  %v2642_v4 = vsel %vm1003_vm3, %v2605_v52, 0.0  ;;  %v2406_v5 = vadd.f32 %v3656_v0, %v2390_v1  ;;  %v2604_v6 = vrot.slane %v2516_v2, 1  ;;  %v2393_v58 = vld [vmem:[#allocation3 + $0x50] sm:$0xff] }
 0x197   : > { %2227 = vst.msk [vmem:[#allocation3 + $0x70] sm:$0xff] %vm284_vm1, %v2211_v55  ;;  %v2652_v7 = vld [vmem:[#allocation3 + $0x18] sm:$0xff]  ;;  %v2334_v8 = vpop.f32.mrf.mxu1  ;;  %v3693_v10 = vpop.f32.mrf.mxu0 }
 0x198   : > { %2681 = vst.msk [vmem:[#allocation3] sm:$0xff] %vm284_vm1, %v2665_v3  ;;  %v2668_v11 = vadd.f32 %v2652_v7, %v2642_v4  ;;  %2422 = vst.msk [vmem:[#allocation3 + $0x38] sm:$0xff] %vm284_vm1, %v2406_v5  ;;  %v2405_v12 = vadd.f32 %v2389_v9, %v2334_v8  ;;  %v2608_v13 = vrot.slane %v3693_v10, 1  ;;  %v2606_v14 = vsel %vm1003_vm3, %v2604_v6, %v2605_v52  ;;  %v2396_v57 = vld [vmem:[#allocation3 + $0x68] sm:$0xff] }
 0x199   : > { %v2651_v15 = vld [vmem:[#allocation3 + $0x10] sm:$0xff]  ;;  %v3659_v16 = vpop.f32.mrf.mxu1  ;;  %v2526_v18 = vpop.f32.mrf.mxu0 }
 0x19a   : > { %2684 = vst.msk [vmem:[#allocation3 + $0x18] sm:$0xff] %vm284_vm1, %v2668_v11  ;;  %v2667_v19 = vadd.f32 %v2651_v15, %v2606_v14  ;;  %2421 = vst.msk [vmem:[#allocation3 + $0x30] sm:$0xff] %vm284_vm1, %v2405_v12  ;;  %v2643_v20 = vsel %vm1003_vm3, %v2608_v13, 0.0  ;;  %v2408_v21 = vadd.f32 %v3659_v16, %v2392_v17  ;;  %v2607_v22 = vrot.slane %v2526_v18, 1  ;;  %v2395_v10 = vld [vmem:[#allocation3 + $0x60] sm:$0xff] }
 0x19b   : > { %v2654_v24 = vld [vmem:[#allocation3 + $0x28] sm:$0xff]  ;;  %v2344_v25 = vpop.f32.mrf.mxu1  ;;  %v3696_v27 = vpop.f32.mrf.mxu0 }
 0x19c   : > { %2683 = vst.msk [vmem:[#allocation3 + $0x10] sm:$0xff] %vm284_vm1, %v2667_v19  ;;  %v2670_v29 = vadd.f32 %v2654_v24, %v2643_v20  ;;  %2424 = vst.msk [vmem:[#allocation3 + $0x48] sm:$0xff] %vm284_vm1, %v2408_v21  ;;  %v2407_v32 = vadd.f32 %v2391_v26, %v2344_v25  ;;  %v2611_v33 = vrot.slane %v3696_v27, 1  ;;  %v2609_v35 = vsel %vm1003_vm3, %v2607_v22, %v2608_v13  ;;  %v2398_v22 = vld [vmem:[#allocation3 + $0x78] sm:$0xff] }
 0x19d   : > { %v2698_v34 = vld [vmem:[#allocation3 + $0x8] sm:$0xff]  ;;  %v2653_v37 = vld [vmem:[#allocation3 + $0x20] sm:$0xff]  ;;  %v3662_v39 = vpop.f32.mrf.mxu1  ;;  %v2536_v41 = vpop.f32.mrf.mxu0 }
 0x19e   : > { %v2721_v42 = vmul.f32 %v4827_v23, %v2698_v34  ;;  %2686 = vst.msk [vmem:[#allocation3 + $0x28] sm:$0xff] %vm284_vm1, %v2670_v29  ;;  %v2669_v45 = vadd.f32 %v2653_v37, %v2609_v35  ;;  %2423 = vst.msk [vmem:[#allocation3 + $0x40] sm:$0xff] %vm284_vm1, %v2407_v32  ;;  %v2644_v46 = vsel %vm1003_vm3, %v2611_v33, 0.0  ;;  %v2410_v48 = vadd.f32 %v3662_v39, %v2394_v40  ;;  %v2397_v40 = vld [vmem:[#allocation3 + $0x70] sm:$0xff] }
 0x19f   : > { %v2697_v50 = vld [vmem:[#allocation3] sm:$0xff]  ;;  %v2656_v53 = vld [vmem:[#allocation3 + $0x38] sm:$0xff]  ;;  %v2610_v54 = vrot.slane %v2536_v41, 1  ;;  %v2354_v56 = vpop.f32.mrf.mxu1  ;;  %v3699_v59 = vpop.f32.mrf.mxu0 }
 0x1a0   : > { %v2744_v60 = vadd.f32 %v4832_v28, %v2721_v42  ;;  %v2720_v61 = vmul.f32 %v4827_v23, %v2697_v50  ;;  %2685 = vst.msk [vmem:[#allocation3 + $0x20] sm:$0xff] %vm284_vm1, %v2669_v45  ;;  %v2672_v62 = vadd.f32 %v2656_v53, %v2644_v46  ;;  %2426 = vst.msk [vmem:[#allocation3 + $0x58] sm:$0xff] %vm284_vm1, %v2410_v48  ;;  %v2614_v43 = vrot.slane %v3699_v59, 1 }
 0x1a1   : > { %v2409_v30 = vadd.f32 %v2393_v58, %v2354_v56  ;;  %v2700_v31 = vld [vmem:[#allocation3 + $0x18] sm:$0xff]  ;;  %v2612_v36 = vsel %vm1003_vm3, %v2610_v54, %v2611_v33  ;;  %v2655_v38 = vld [vmem:[#allocation3 + $0x30] sm:$0xff]  ;;  %v3665_v44 = vpop.f32.mrf.mxu1  ;;  %v2546_v47 = vpop.f32.mrf.mxu0 }
 0x1a2   : > { %v2760_v49 = vmax.f32 %v2744_v60, 0.0  ;;  %v2743_v51 = vadd.f32 %v4832_v28, %v2720_v61  ;;  %v2723_v52 = vmul.f32 %v4827_v23, %v2700_v31  ;;  %2688 = vst.msk [vmem:[#allocation3 + $0x38] sm:$0xff] %vm284_vm1, %v2672_v62  ;;  %v2671_v55 = vadd.f32 %v2655_v38, %v2612_v36 }
 0x1a3   : > { %2425 = vst.msk [vmem:[#allocation3 + $0x50] sm:$0xff] %vm284_vm1, %v2409_v30  ;;  %v2699_v63 = vld [vmem:[#allocation3 + $0x10] sm:$0xff]  ;;  %v2645_v0 = vsel %vm1003_vm3, %v2614_v43, 0.0  ;;  %v2658_v1 = vld [vmem:[#allocation3 + $0x48] sm:$0xff]  ;;  %v2412_v2 = vadd.f32 %v3665_v44, %v2396_v57  ;;  %v2613_v3 = vrot.slane %v2546_v47, 1  ;;  %v2364_v4 = vpop.f32.mrf.mxu1  ;;  %v3702_v5 = vpop.f32.mrf.mxu0 }
 0x1a4   : > { %2776 = vst.msk [vmem:[%s4049_s30 + $0x8] sm:$0xff] %vm284_vm1, %v2760_v49  ;;  %v2759_v6 = vmax.f32 %v2743_v51, 0.0  ;;  %v2746_v7 = vadd.f32 %v4832_v28, %v2723_v52  ;;  %v2722_v8 = vmul.f32 %v4827_v23, %v2699_v63  ;;  %2687 = vst.msk [vmem:[#allocation3 + $0x30] sm:$0xff] %vm284_vm1, %v2671_v55  ;;  %v2674_v9 = vadd.f32 %v2658_v1, %v2645_v0 }
 0x1a5   : > { %v2702_v11 = vld [vmem:[#allocation3 + $0x28] sm:$0xff]  ;;  %2428 = vst.msk [vmem:[#allocation3 + $0x68] sm:$0xff] %vm284_vm1, %v2412_v2  ;;  %v2615_v12 = vsel %vm1003_vm3, %v2613_v3, %v2614_v43  ;;  %v2657_v13 = vld [vmem:[#allocation3 + $0x40] sm:$0xff]  ;;  %v2411_v14 = vadd.f32 %v2395_v10, %v2364_v4  ;;  %v2617_v15 = vrot.slane %v3702_v5, 1  ;;  %v3668_v16 = vpop.f32.mrf.mxu1  ;;  %v2556_v17 = vpop.f32.mrf.mxu0 }
 0x1a6   : > { %2775 = vst.msk [vmem:[%s4049_s30] sm:$0xff] %vm284_vm1, %v2759_v6  ;;  %v2762_v18 = vmax.f32 %v2746_v7, 0.0  ;;  %v2745_v19 = vadd.f32 %v4832_v28, %v2722_v8  ;;  %v2725_v20 = vmul.f32 %v4827_v23, %v2702_v11  ;;  %2690 = vst.msk [vmem:[#allocation3 + $0x48] sm:$0xff] %vm284_vm1, %v2674_v9  ;;  %v2673_v21 = vadd.f32 %v2657_v13, %v2615_v12 }
 0x1a7   : > { %v2701_v24 = vld [vmem:[#allocation3 + $0x20] sm:$0xff]  ;;  %2427 = vst.msk [vmem:[#allocation3 + $0x60] sm:$0xff] %vm284_vm1, %v2411_v14  ;;  %v2646_v25 = vsel %vm1003_vm3, %v2617_v15, 0.0  ;;  %v2660_v26 = vld [vmem:[#allocation3 + $0x58] sm:$0xff]  ;;  %v2414_v27 = vadd.f32 %v3668_v16, %v2398_v22  ;;  %v2616_v29 = vrot.slane %v2556_v17, 1  ;;  %v2374_v32 = vpop.f32.mrf.mxu1  ;;  %v3705_v33 = vpop.f32.mrf.mxu0 }
 0x1a8   : > { %2778 = vst.msk [vmem:[%s4049_s30 + $0x18] sm:$0xff] %vm284_vm1, %v2762_v18  ;;  %v2761_v34 = vmax.f32 %v2745_v19, 0.0  ;;  %v2748_v35 = vadd.f32 %v4832_v28, %v2725_v20  ;;  %v2724_v37 = vmul.f32 %v4827_v23, %v2701_v24  ;;  %2689 = vst.msk [vmem:[#allocation3 + $0x40] sm:$0xff] %vm284_vm1, %v2673_v21  ;;  %v2676_v39 = vadd.f32 %v2660_v26, %v2646_v25 }
 0x1a9   : > { %v2704_v41 = vld [vmem:[#allocation3 + $0x38] sm:$0xff]  ;;  %2430 = vst.msk [vmem:[#allocation3 + $0x78] sm:$0xff] %vm284_vm1, %v2414_v27  ;;  %v2618_v42 = vsel %vm1003_vm3, %v2616_v29, %v2617_v15  ;;  %v2413_v46 = vadd.f32 %v2397_v40, %v2374_v32  ;;  %v2620_v48 = vrot.slane %v3705_v33, 1  ;;  %v2566_v50 = vpop.f32.mrf.mxu0 }
 0x1aa   : > { %v2659_v45 = vld [vmem:[#allocation3 + $0x50] sm:$0xff]  ;;  %2777 = vst.msk [vmem:[%s4049_s30 + $0x10] sm:$0xff] %vm284_vm1, %v2761_v34  ;;  %v2764_v53 = vmax.f32 %v2748_v35, 0.0  ;;  %v2747_v54 = vadd.f32 %v4832_v28, %v2724_v37  ;;  %v2727_v56 = vmul.f32 %v4827_v23, %v2704_v41  ;;  %2692 = vst.msk [vmem:[#allocation3 + $0x58] sm:$0xff] %vm284_vm1, %v2676_v39  ;;  %v2619_v61 = vrot.slane %v2566_v50, 1 }
 0x1ab   : > { %v2675_v58 = vadd.f32 %v2659_v45, %v2618_v42  ;;  %v2703_v59 = vld [vmem:[#allocation3 + $0x30] sm:$0xff]  ;;  %2429 = vst.msk [vmem:[#allocation3 + $0x70] sm:$0xff] %vm284_vm1, %v2413_v46  ;;  %v2647_v60 = vsel %vm1003_vm3, %v2620_v48, 0.0  ;;  %v3708_v62 = vpop.f32.mrf.mxu0 }
 0x1ac   : > { %2780 = vst.msk [vmem:[%s4049_s30 + $0x28] sm:$0xff] %vm284_vm1, %v2764_v53  ;;  %v2763_v30 = vmax.f32 %v2747_v54, 0.0  ;;  %v2750_v31 = vadd.f32 %v4832_v28, %v2727_v56  ;;  %v2726_v36 = vmul.f32 %v4827_v23, %v2703_v59  ;;  %v2662_v38 = vld [vmem:[#allocation3 + $0x68] sm:$0xff]  ;;  %v2623_v43 = vrot.slane %v3708_v62, 1 }
 0x1ad   : > { %2691 = vst.msk [vmem:[#allocation3 + $0x50] sm:$0xff] %vm284_vm1, %v2675_v58  ;;  %v2706_v44 = vld [vmem:[#allocation3 + $0x48] sm:$0xff]  ;;  %v2678_v47 = vadd.f32 %v2662_v38, %v2647_v60  ;;  %v2621_v49 = vsel %vm1003_vm3, %v2619_v61, %v2620_v48  ;;  %v2576_v51 = vpop.f32.mrf.mxu0 }
 0x1ae   : > { %2779 = vst.msk [vmem:[%s4049_s30 + $0x20] sm:$0xff] %vm284_vm1, %v2763_v30  ;;  %v2766_v52 = vmax.f32 %v2750_v31, 0.0  ;;  %v2749_v55 = vadd.f32 %v4832_v28, %v2726_v36  ;;  %v2729_v57 = vmul.f32 %v4827_v23, %v2706_v44  ;;  %v2661_v63 = vld [vmem:[#allocation3 + $0x60] sm:$0xff]  ;;  %v2648_v0 = vsel %vm1003_vm3, %v2623_v43, 0.0 }
 0x1af   : > { %v2705_v1 = vld [vmem:[#allocation3 + $0x40] sm:$0xff]  ;;  %2694 = vst.msk [vmem:[#allocation3 + $0x68] sm:$0xff] %vm284_vm1, %v2678_v47  ;;  %v2677_v2 = vadd.f32 %v2661_v63, %v2621_v49  ;;  %v2622_v3 = vrot.slane %v2576_v51, 1 }
 0x1b0   : > { %2782 = vst.msk [vmem:[%s4049_s30 + $0x38] sm:$0xff] %vm284_vm1, %v2766_v52  ;;  %v2765_v4 = vmax.f32 %v2749_v55, 0.0  ;;  %v2752_v5 = vadd.f32 %v4832_v28, %v2729_v57  ;;  %v2728_v6 = vmul.f32 %v4827_v23, %v2705_v1  ;;  %v2664_v7 = vld [vmem:[#allocation3 + $0x78] sm:$0xff] }
 0x1b1   : > { %v2708_v8 = vld [vmem:[#allocation3 + $0x58] sm:$0xff]  ;;  %2693 = vst.msk [vmem:[#allocation3 + $0x60] sm:$0xff] %vm284_vm1, %v2677_v2  ;;  %v2680_v9 = vadd.f32 %v2664_v7, %v2648_v0  ;;  %v2624_v13 = vsel %vm1003_vm3, %v2622_v3, %v2623_v43 }
 0x1b2   : > { %2781 = vst.msk [vmem:[%s4049_s30 + $0x30] sm:$0xff] %vm284_vm1, %v2765_v4  ;;  %v2768_v10 = vmax.f32 %v2752_v5, 0.0  ;;  %v2751_v11 = vadd.f32 %v4832_v28, %v2728_v6  ;;  %v2731_v12 = vmul.f32 %v4827_v23, %v2708_v8  ;;  %v2663_v14 = vld [vmem:[#allocation3 + $0x70] sm:$0xff] }
 0x1b3   : > { %2696 = vst.msk [vmem:[#allocation3 + $0x78] sm:$0xff] %vm284_vm1, %v2680_v9  ;;  %v2679_v16 = vadd.f32 %v2663_v14, %v2624_v13 }
 0x1b4   : > { %v2707_v15 = vld [vmem:[#allocation3 + $0x50] sm:$0xff]  ;;  %2784 = vst.msk [vmem:[%s4049_s30 + $0x48] sm:$0xff] %vm284_vm1, %v2768_v10  ;;  %v2767_v17 = vmax.f32 %v2751_v11, 0.0  ;;  %v2754_v18 = vadd.f32 %v4832_v28, %v2731_v12 }
 0x1b5   : > { %v2730_v19 = vmul.f32 %v4827_v23, %v2707_v15  ;;  %2695 = vst.msk [vmem:[#allocation3 + $0x70] sm:$0xff] %vm284_vm1, %v2679_v16 }
 0x1b6   : > { %2783 = vst.msk [vmem:[%s4049_s30 + $0x40] sm:$0xff] %vm284_vm1, %v2767_v17  ;;  %v2770_v20 = vmax.f32 %v2754_v18, 0.0  ;;  %v2710_v22 = vld [vmem:[#allocation3 + $0x68] sm:$0xff] }
 0x1b7   : > { %v2753_v21 = vadd.f32 %v4832_v28, %v2730_v19  ;;  %v2733_v24 = vmul.f32 %v4827_v23, %v2710_v22 }
 0x1b8   : > { %2786 = vst.msk [vmem:[%s4049_s30 + $0x58] sm:$0xff] %vm284_vm1, %v2770_v20  ;;  %v2709_v26 = vld [vmem:[#allocation3 + $0x60] sm:$0xff] }
 0x1b9   : > { %v2769_v25 = vmax.f32 %v2753_v21, 0.0  ;;  %v2756_v27 = vadd.f32 %v4832_v28, %v2733_v24  ;;  %v2732_v29 = vmul.f32 %v4827_v23, %v2709_v26 }
 0x1ba   : > { %v2712_v32 = vld [vmem:[#allocation3 + $0x78] sm:$0xff] }
 0x1bb   : > { %2785 = vst.msk [vmem:[%s4049_s30 + $0x50] sm:$0xff] %vm284_vm1, %v2769_v25  ;;  %v2772_v33 = vmax.f32 %v2756_v27, 0.0  ;;  %v2755_v34 = vadd.f32 %v4832_v28, %v2732_v29  ;;  %v2735_v35 = vmul.f32 %v4827_v23, %v2712_v32 }
 0x1bc   : > { %v2711_v37 = vld [vmem:[#allocation3 + $0x70] sm:$0xff] }
 0x1bd   : > { %2788 = vst.msk [vmem:[%s4049_s30 + $0x68] sm:$0xff] %vm284_vm1, %v2772_v33  ;;  %v2771_v39 = vmax.f32 %v2755_v34, 0.0  ;;  %v2758_v40 = vadd.f32 %v4832_v28, %v2735_v35  ;;  %v2734_v41 = vmul.f32 %v4827_v23, %v2711_v37 }
 0x1bf   : > { %2787 = vst.msk [vmem:[%s4049_s30 + $0x60] sm:$0xff] %vm284_vm1, %v2771_v39  ;;  %v2774_v42 = vmax.f32 %v2758_v40, 0.0  ;;  %v2757_v45 = vadd.f32 %v4832_v28, %v2734_v41 }
 0x1c1   : > { %2790 = vst.msk [vmem:[%s4049_s30 + $0x78] sm:$0xff] %vm284_vm1, %v2774_v42  ;;  %v2773_v23 = vmax.f32 %v2757_v45, 0.0 }
 0x1c3   : > { %2789 = vst.msk [vmem:[%s4049_s30 + $0x70] sm:$0xff] %vm284_vm1, %v2773_v23 }
 0x1c4   : > { %3814 = shalt.err (!%p3811_p11)
}
 0x1c5   : > { %s3815_s8 = scalar_lea.hbm %s4932_s9, 2048  ;;  %s3819_s27 = scalar_lea.hbm %s4997_s4, 8192 }
 0x1c6   : > { %p3816_p12 = scmp.ne.s32.totalorder %s4932_s9, %s3815_s8  ;;  %p3820_p1 = scmp.lt.s32.totalorder %s4932_s9, %s4997_s4 }
 0x1c7   : > { %p3821_p2 = scmp.lt.s32.totalorder %s3819_s27, %s3815_s8 }
 0x1c8   : > { %p3817_p13 = pnand %p3816_p12, %p3977_p3 }
 0x1c9   : > { %p3822_p4 = por %p3821_p2, %p3820_p1 }
 0x1ca   : > { %p3818_p0 = pneg %p3817_p13 }
 0x1cc   : > { %p3823_p5 = pnand %p3822_p4, %p3818_p0 }
 0x1ce   : > { %3826 = shalt.err (!%p3823_p5)
}
 0x1cf   : > { %s3899_s6 = smov 128   ;;  %s3900_s11 = smov 8  }
 0x1d0   : > { %3725 = dma.vmem_to_hbm [thread:$0]  (%p3977_p3), %s4934_s19, 2048, %s4932_s9, %s4942_s10, %s3899_s6, %s3899_s6, %s3900_s11  }
 0x1d1 PF: > { %p3731_p6 = scmp.ge.s32.totalorder %s3893_s22, 2  ;;  %s2823_s12 = sand.u32 1, %s3865_s15  }
 0x1d2   : > { %s2824_s13 = scalar_lea.sflag [#allocation5], %s2823_s12 }
 0x1d3   : > { %p3728_p7 = pnand %p3731_p6, %p3986_p8 }
 0x1d5   : > { %p3729_p9 = pneg %p3728_p7 }
 0x1d7   : > { %3860 = dma.done.wait (%p3729_p9), %s2824_s13, 2048  }
 0x1d8   : > { %3862 = vsyncadd (%p3729_p9), %s2824_s13, 4294965248  ;;  %s17_s22 = sadd.s32 1, %s3893_s22   ;;  %s5000_s15 = smov %s3869_s16 }
 0x1d9   : > { %p14_p10 = scmp.ge.s32.totalorder %s17_s22, 6   ;;  %s5001_s16 = smov %s3873_s17 }
 0x1da   : > { %s5002_s17 = smov %s3995_s7  ;;  %s5003_s18 = smov %s3885_s20 }
 0x1db   : > { %s5004_s19 = smov %s3889_s21  ;;  %s5005_s20 = smov %s5008_s25 }
 0x1dc   : > { %s5006_s21 = smov %s5012_s26  ;;  %16 = sbr.rel (!%p14_p10) target bundleno = 5 (0x5), region = 102 }
 0x1e1   :  { %2829 = vsyncpa [#allocation5], 1 }
 0x1e2   :  { %2831 = vsyncpa [#allocation5 + $0x1], 1 }

</bundles_post_ra>
